<compile_context>
chip_gen: v5e
topology: v5e:2x2
jax: 0.10.0
libtpu: 0.0.40
codegen_flags: <defaults>
</compile_context>

<pallas_src>
import functools
import math

import jax
import jax.numpy as jnp
from jax import lax
from jax.experimental import pallas as pl
from jax.experimental.pallas import tpu as pltpu

NUM_BINS = 256
MARGIN = 1.0
ROW_WIDTH = 512        # elements per kernel "row" (lane axis), multiple of 128
MAX_CHUNK_ROWS = 256   # 256 rows x 512 lanes x 4 B = 512 KiB per input block


def _round_up(a, m):
    return ((a + m - 1) // m) * m


def _split_bins(num_bins):
    """Split num_bins into (hi_bins, lo_bins) with lo_bins a power of two <= 32."""
    lo = 1
    while lo < 32 and num_bins % (lo * 2) == 0:
        lo *= 2
    return num_bins // lo, lo


def _hist_counts_kernel(x_ref, y_ref, cx_ref, cy_ref, *, num_bins, hi_bins,
                        lo_bins, n_valid, width):
    """Raw (hi_bins, lo_bins) histogram counts for this (image, chunk) block."""
    c = pl.program_id(1)
    chunk_rows = x_ref.shape[1]
    n_groups = chunk_rows // 8          # chunk_rows is a multiple of 8 by construction

    # Hoisted constants, reused for every row group and both tensors.
    hi_iota = lax.broadcasted_iota(jnp.int32, (hi_bins, width), 0)
    lo_iota = lax.broadcasted_iota(jnp.int32, (lo_bins, width), 0)
    sub_iota = (lax.broadcasted_iota(jnp.int32, (8, width), 0) * width
                + lax.broadcasted_iota(jnp.int32, (8, width), 1))
    scale = jnp.float32(num_bins) / jnp.float32(255.0)
    lo_shift = lo_bins.bit_length() - 1          # lo_bins is a power of two
    lo_mask = lo_bins - 1
    chunk_base = c * (chunk_rows * width)
    nt_dims = (((1,), (1,)), ((), ()))           # contract lane dims: A @ B^T

    def group_counts(ref, g, acc):
        # Bin-index math on a fully packed (8, width) tile.
        start = pl.multiple_of(g * 8, 8)
        vals = ref[0, pl.ds(start, 8), :] * jnp.float32(255.0)      # (8, width)
        elem = sub_iota + (chunk_base + g * (8 * width))            # global element id
        # torch.histc(v, bins, min=0, max=255): idx = floor(v * bins / 255), clamp top.
        idx = jnp.floor(vals * scale).astype(jnp.int32)
        idx = jnp.clip(idx, 0, num_bins - 1)
        # histc ignores values outside [min, max]; also drop tail / pad elements.
        valid = ((elem < n_valid)
                 & (vals >= jnp.float32(0.0))
                 & (vals <= jnp.float32(255.0)))
        hi = jnp.where(valid, idx >> lo_shift, -1)   # -1 never matches hi_iota
        lo = idx & lo_mask
        # 8 per-row one-hot outer products accumulated on the MXU (static unroll).
        for j in range(8):
            hi_oh = (hi_iota == hi[j:j + 1, :]).astype(jnp.bfloat16)   # (hi_bins, width)
            lo_oh = (lo_iota == lo[j:j + 1, :]).astype(jnp.bfloat16)   # (lo_bins, width)
            acc = acc + lax.dot_general(hi_oh, lo_oh, nt_dims,
                                        preferred_element_type=jnp.float32)
        return acc

    def body(g, carry):
        acc_x, acc_y = carry
        return group_counts(x_ref, g, acc_x), group_counts(y_ref, g, acc_y)

    zeros = jnp.zeros((hi_bins, lo_bins), jnp.float32)
    acc_x, acc_y = lax.fori_loop(0, n_groups, body, (zeros, zeros))
    cx_ref[0, 0, :, :] = acc_x
    cy_ref[0, 0, :, :] = acc_y


def histogram_loss(x, y, num_bins=NUM_BINS, margin=MARGIN):
    """Pallas implementation of HistogramLoss.forward(x, y) -> scalar f32."""
    assert x.shape == y.shape
    b = x.shape[0]
    n = math.prod(x.shape[1:])
    hi_bins, lo_bins = _split_bins(num_bins)

    rows = pl.cdiv(n, ROW_WIDTH)
    nc = pl.cdiv(rows, MAX_CHUNK_ROWS)            # chunks per image
    cr = _round_up(pl.cdiv(rows, nc), 8)          # rows per chunk, multiple of 8
    rows_pad = nc * cr                            # grid covers the array exactly

    def _prep(a):
        a = a.reshape(b, n).astype(jnp.float32)
        pad = rows_pad * ROW_WIDTH - n
        if pad:
            # TODO(synk): unaligned sizes cost one padded copy; the kernel masks by
            # global element index so the pad value is irrelevant; aligned case is copy-free.
            a = jnp.pad(a, ((0, 0), (0, pad)))
        return a.reshape(b, rows_pad, ROW_WIDTH)

    xf = _prep(x)
    yf = _prep(y)

    kernel = functools.partial(_hist_counts_kernel, num_bins=num_bins,
                               hi_bins=hi_bins, lo_bins=lo_bins,
                               n_valid=n, width=ROW_WIDTH)
    out_sds = jax.ShapeDtypeStruct((b, nc, hi_bins, lo_bins), jnp.float32)
    counts_x, counts_y = pl.pallas_call(
        kernel,
        out_shape=(out_sds, out_sds),
        grid=(b, nc),
        in_specs=[
            pl.BlockSpec((1, cr, ROW_WIDTH), lambda i, c: (i, c, 0)),
            pl.BlockSpec((1, cr, ROW_WIDTH), lambda i, c: (i, c, 0)),
        ],
        out_specs=(
            pl.BlockSpec((1, 1, hi_bins, lo_bins), lambda i, c: (i, c, 0, 0)),
            pl.BlockSpec((1, 1, hi_bins, lo_bins), lambda i, c: (i, c, 0, 0)),
        ),
        compiler_params=pltpu.CompilerParams(
            dimension_semantics=("parallel", "parallel"),
        ),
    )(xf, yf)

    def _hist(counts):
        c = jnp.sum(counts, axis=1).reshape(b, hi_bins * lo_bins)   # (B, num_bins)
        return c / jnp.sum(c, axis=1, keepdims=True)                # per-image normalize

    s = jnp.sum(jnp.sqrt(_hist(counts_x)) - jnp.sqrt(_hist(counts_y)))
    # TODO(synk): `loss.requires_grad = True` is autograd bookkeeping, no forward-pass equivalent.
    return jnp.clip(s * s, jnp.float32(0.0), jnp.float32(margin))


def _reference_loss(x_np, y_np, num_bins=NUM_BINS, margin=MARGIN):
    import numpy as np

    def hist(img):
        v = np.asarray(img, dtype=np.float32).reshape(-1) * np.float32(255.0)
        scale = np.float32(num_bins) / np.float32(255.0)
        idx = np.floor(v * scale).astype(np.int64)
        idx = np.clip(idx, 0, num_bins - 1)
        valid = (v >= 0.0) & (v <= 255.0)
        counts = np.bincount(idx[valid], minlength=num_bins).astype(np.float64)
        return counts / counts.sum()

    s = 0.0
    for i in range(x_np.shape[0]):
        s += float(np.sum(np.sqrt(hist(x_np[i])) - np.sqrt(hist(y_np[i]))))
    return float(min(max(s * s, 0.0), margin))


if __name__ == "__main__":
    import numpy as np

    key = jax.random.PRNGKey(0)
    kx, ky = jax.random.split(key)
    B, C, H, W = 2, 4, 16, 16
    x = jax.random.uniform(kx, (B, C, H, W), dtype=jnp.float32)
    y = jax.random.uniform(ky, (B, C, H, W), dtype=jnp.float32)

    loss = jax.block_until_ready(histogram_loss(x, y))

    ref = _reference_loss(np.asarray(x), np.asarray(y))
    assert abs(float(loss) - ref) < 1e-3, (float(loss), ref)
    print("KERNEL_OK")
</pallas_src>

<mosaic_0001>
module attributes {stable_mosaic.version = 11 : i64} {
  func.func @_hist_counts_kernel(%arg0: i32, %arg1: i32, %arg2: memref<1x8x512xf32, #tpu.memory_space<vmem>>, %arg3: memref<1x8x512xf32, #tpu.memory_space<vmem>>, %arg4: memref<1x1x8x32xf32, #tpu.memory_space<vmem>>, %arg5: memref<1x1x8x32xf32, #tpu.memory_space<vmem>>) attributes {dimension_semantics = [#tpu.dimension_semantics<parallel>, #tpu.dimension_semantics<parallel>], iteration_bounds = array<i64: 2, 1>, scalar_prefetch = 0 : i64, scratch_operands = 0 : i64, tpu.core_type = #tpu.core_type<tc>, window_params = [{transform_indices = @transform_0, window_bounds = array<i64: 1, 8, 512>}, {transform_indices = @transform_1, window_bounds = array<i64: 1, 8, 512>}, {transform_indices = @transform_2, window_bounds = array<i64: 1, 1, 8, 32>}, {transform_indices = @transform_3, window_bounds = array<i64: 1, 1, 8, 32>}]} {
    %0 = tpu.iota {dimensions = array<i32: 0>} : vector<8x512xi32>
    %1 = tpu.iota {dimensions = array<i32: 0>} : vector<32x512xi32>
    %2 = tpu.iota {dimensions = array<i32: 0>} : vector<8x512xi32>
    %c512_i32 = arith.constant 512 : i32
    %3 = vector.broadcast %c512_i32 : i32 to vector<8x512xi32>
    %4 = arith.muli %2, %3 : vector<8x512xi32>
    %5 = tpu.iota {dimensions = array<i32: 1>} : vector<8x512xi32>
    %6 = arith.addi %4, %5 : vector<8x512xi32>
    %cst = arith.constant 2.560000e+02 : f32
    %cst_0 = arith.constant 2.550000e+02 : f32
    %7 = arith.divf %cst, %cst_0 : f32
    %c4096_i32 = arith.constant 4096 : i32
    %8 = arith.muli %arg1, %c4096_i32 : i32
    %cst_1 = arith.constant 0.000000e+00 : f32
    %9 = vector.broadcast %cst_1 : f32 to vector<8x32xf32>
    %c0_i32 = arith.constant 0 : i32
    %c8_i32 = arith.constant 8 : i32
    %10 = arith.muli %c0_i32, %c8_i32 : i32
    %11 = tpu.assume_multiple %10, 8 : i32
    %c0 = arith.constant 0 : index
    %12 = arith.index_cast %11 : i32 to index
    %c0_2 = arith.constant 0 : index
    %13 = vector.load %arg2[%c0, %12, %c0_2] : memref<1x8x512xf32, #tpu.memory_space<vmem>>, vector<1x8x512xf32>
    %14 = vector.shape_cast %13 : vector<1x8x512xf32> to vector<8x512xf32>
    %cst_3 = arith.constant 2.550000e+02 : f32
    %15 = vector.broadcast %cst_3 : f32 to vector<8x512xf32>
    %16 = arith.mulf %14, %15 : vector<8x512xf32>
    %c4096_i32_4 = arith.constant 4096 : i32
    %17 = arith.muli %c0_i32, %c4096_i32_4 : i32
    %18 = arith.addi %8, %17 : i32
    %19 = vector.broadcast %18 : i32 to vector<8x512xi32>
    %20 = arith.addi %6, %19 : vector<8x512xi32>
    %21 = vector.broadcast %7 : f32 to vector<8x512xf32>
    %22 = arith.mulf %16, %21 : vector<8x512xf32>
    %23 = math.floor %22 : vector<8x512xf32>
    %24 = arith.fptosi %23 : vector<8x512xf32> to vector<8x512xi32>
    %c0_i32_5 = arith.constant 0 : i32
    %c255_i32 = arith.constant 255 : i32
    %25 = vector.broadcast %c0_i32_5 : i32 to vector<8x512xi32>
    %26 = arith.maxsi %25, %24 : vector<8x512xi32>
    %27 = vector.broadcast %c255_i32 : i32 to vector<8x512xi32>
    %28 = arith.minsi %27, %26 : vector<8x512xi32>
    %c1024_i32 = arith.constant 1024 : i32
    %29 = vector.broadcast %c1024_i32 : i32 to vector<8x512xi32>
    %30 = arith.cmpi slt, %20, %29 : vector<8x512xi32>
    %cst_6 = arith.constant 0.000000e+00 : f32
    %31 = vector.broadcast %cst_6 : f32 to vector<8x512xf32>
    %32 = arith.cmpf oge, %16, %31 : vector<8x512xf32>
    %33 = arith.andi %30, %32 : vector<8x512xi1>
    %cst_7 = arith.constant 2.550000e+02 : f32
    %34 = vector.broadcast %cst_7 : f32 to vector<8x512xf32>
    %35 = arith.cmpf ole, %16, %34 : vector<8x512xf32>
    %36 = arith.andi %33, %35 : vector<8x512xi1>
    %c5_i32 = arith.constant 5 : i32
    %37 = vector.broadcast %c5_i32 : i32 to vector<8x512xi32>
    %38 = arith.shrsi %28, %37 : vector<8x512xi32>
    %c-1_i32 = arith.constant -1 : i32
    %39 = vector.broadcast %c-1_i32 : i32 to vector<8x512xi32>
    %40 = arith.select %36, %38, %39 : vector<8x512xi1>, vector<8x512xi32>
    %c31_i32 = arith.constant 31 : i32
    %41 = vector.broadcast %c31_i32 : i32 to vector<8x512xi32>
    %42 = arith.andi %28, %41 : vector<8x512xi32>
    %43 = vector.extract_strided_slice %40 {offsets = [0, 0], sizes = [1, 512], strides = [1, 1]} : vector<8x512xi32> to vector<1x512xi32>
    %44 = vector.broadcast %43 : vector<1x512xi32> to vector<8x512xi32>
    %45 = arith.cmpi eq, %0, %44 : vector<8x512xi32>
    %46 = arith.extui %45 : vector<8x512xi1> to vector<8x512xi32>
    %47 = arith.sitofp %46 : vector<8x512xi32> to vector<8x512xf32>
    %48 = arith.truncf %47 : vector<8x512xf32> to vector<8x512xbf16>
    %49 = vector.extract_strided_slice %42 {offsets = [0, 0], sizes = [1, 512], strides = [1, 1]} : vector<8x512xi32> to vector<1x512xi32>
    %50 = vector.broadcast %49 : vector<1x512xi32> to vector<32x512xi32>
    %51 = arith.cmpi eq, %1, %50 : vector<32x512xi32>
    %52 = arith.extui %51 : vector<32x512xi1> to vector<32x512xi32>
    %53 = arith.sitofp %52 : vector<32x512xi32> to vector<32x512xf32>
    %54 = arith.truncf %53 : vector<32x512xf32> to vector<32x512xbf16>
    %cst_8 = arith.constant dense<0.000000e+00> : vector<8x32xf32>
    %55 = tpu.matmul %48, %54, %cst_8 {dimension_numbers = #tpu.dot_dimension_numbers<[1], [1], [0], [0], [0, 0, 1, 0], [], []>} : vector<8x512xbf16>, vector<32x512xbf16>, vector<8x32xf32> -> vector<8x32xf32>
    %56 = arith.addf %9, %55 : vector<8x32xf32>
    %57 = vector.extract_strided_slice %40 {offsets = [1, 0], sizes = [1, 512], strides = [1, 1]} : vector<8x512xi32> to vector<1x512xi32>
    %58 = vector.broadcast %57 : vector<1x512xi32> to vector<8x512xi32>
    %59 = arith.cmpi eq, %0, %58 : vector<8x512xi32>
    %60 = arith.extui %59 : vector<8x512xi1> to vector<8x512xi32>
    %61 = arith.sitofp %60 : vector<8x512xi32> to vector<8x512xf32>
    %62 = arith.truncf %61 : vector<8x512xf32> to vector<8x512xbf16>
    %63 = vector.extract_strided_slice %42 {offsets = [1, 0], sizes = [1, 512], strides = [1, 1]} : vector<8x512xi32> to vector<1x512xi32>
    %64 = vector.broadcast %63 : vector<1x512xi32> to vector<32x512xi32>
    %65 = arith.cmpi eq, %1, %64 : vector<32x512xi32>
    %66 = arith.extui %65 : vector<32x512xi1> to vector<32x512xi32>
    %67 = arith.sitofp %66 : vector<32x512xi32> to vector<32x512xf32>
    %68 = arith.truncf %67 : vector<32x512xf32> to vector<32x512xbf16>
    %cst_9 = arith.constant dense<0.000000e+00> : vector<8x32xf32>
    %69 = tpu.matmul %62, %68, %cst_9 {dimension_numbers = #tpu.dot_dimension_numbers<[1], [1], [0], [0], [0, 0, 1, 0], [], []>} : vector<8x512xbf16>, vector<32x512xbf16>, vector<8x32xf32> -> vector<8x32xf32>
    %70 = arith.addf %56, %69 : vector<8x32xf32>
    %71 = vector.extract_strided_slice %40 {offsets = [2, 0], sizes = [1, 512], strides = [1, 1]} : vector<8x512xi32> to vector<1x512xi32>
    %72 = vector.broadcast %71 : vector<1x512xi32> to vector<8x512xi32>
    %73 = arith.cmpi eq, %0, %72 : vector<8x512xi32>
    %74 = arith.extui %73 : vector<8x512xi1> to vector<8x512xi32>
    %75 = arith.sitofp %74 : vector<8x512xi32> to vector<8x512xf32>
    %76 = arith.truncf %75 : vector<8x512xf32> to vector<8x512xbf16>
    %77 = vector.extract_strided_slice %42 {offsets = [2, 0], sizes = [1, 512], strides = [1, 1]} : vector<8x512xi32> to vector<1x512xi32>
    %78 = vector.broadcast %77 : vector<1x512xi32> to vector<32x512xi32>
    %79 = arith.cmpi eq, %1, %78 : vector<32x512xi32>
    %80 = arith.extui %79 : vector<32x512xi1> to vector<32x512xi32>
    %81 = arith.sitofp %80 : vector<32x512xi32> to vector<32x512xf32>
    %82 = arith.truncf %81 : vector<32x512xf32> to vector<32x512xbf16>
    %cst_10 = arith.constant dense<0.000000e+00> : vector<8x32xf32>
    %83 = tpu.matmul %76, %82, %cst_10 {dimension_numbers = #tpu.dot_dimension_numbers<[1], [1], [0], [0], [0, 0, 1, 0], [], []>} : vector<8x512xbf16>, vector<32x512xbf16>, vector<8x32xf32> -> vector<8x32xf32>
    %84 = arith.addf %70, %83 : vector<8x32xf32>
    %85 = vector.extract_strided_slice %40 {offsets = [3, 0], sizes = [1, 512], strides = [1, 1]} : vector<8x512xi32> to vector<1x512xi32>
    %86 = vector.broadcast %85 : vector<1x512xi32> to vector<8x512xi32>
    %87 = arith.cmpi eq, %0, %86 : vector<8x512xi32>
    %88 = arith.extui %87 : vector<8x512xi1> to vector<8x512xi32>
    %89 = arith.sitofp %88 : vector<8x512xi32> to vector<8x512xf32>
    %90 = arith.truncf %89 : vector<8x512xf32> to vector<8x512xbf16>
    %91 = vector.extract_strided_slice %42 {offsets = [3, 0], sizes = [1, 512], strides = [1, 1]} : vector<8x512xi32> to vector<1x512xi32>
    %92 = vector.broadcast %91 : vector<1x512xi32> to vector<32x512xi32>
    %93 = arith.cmpi eq, %1, %92 : vector<32x512xi32>
    %94 = arith.extui %93 : vector<32x512xi1> to vector<32x512xi32>
    %95 = arith.sitofp %94 : vector<32x512xi32> to vector<32x512xf32>
    %96 = arith.truncf %95 : vector<32x512xf32> to vector<32x512xbf16>
    %cst_11 = arith.constant dense<0.000000e+00> : vector<8x32xf32>
    %97 = tpu.matmul %90, %96, %cst_11 {dimension_numbers = #tpu.dot_dimension_numbers<[1], [1], [0], [0], [0, 0, 1, 0], [], []>} : vector<8x512xbf16>, vector<32x512xbf16>, vector<8x32xf32> -> vector<8x32xf32>
    %98 = arith.addf %84, %97 : vector<8x32xf32>
    %99 = vector.extract_strided_slice %40 {offsets = [4, 0], sizes = [1, 512], strides = [1, 1]} : vector<8x512xi32> to vector<1x512xi32>
    %100 = vector.broadcast %99 : vector<1x512xi32> to vector<8x512xi32>
    %101 = arith.cmpi eq, %0, %100 : vector<8x512xi32>
    %102 = arith.extui %101 : vector<8x512xi1> to vector<8x512xi32>
    %103 = arith.sitofp %102 : vector<8x512xi32> to vector<8x512xf32>
    %104 = arith.truncf %103 : vector<8x512xf32> to vector<8x512xbf16>
    %105 = vector.extract_strided_slice %42 {offsets = [4, 0], sizes = [1, 512], strides = [1, 1]} : vector<8x512xi32> to vector<1x512xi32>
    %106 = vector.broadcast %105 : vector<1x512xi32> to vector<32x512xi32>
    %107 = arith.cmpi eq, %1, %106 : vector<32x512xi32>
    %108 = arith.extui %107 : vector<32x512xi1> to vector<32x512xi32>
    %109 = arith.sitofp %108 : vector<32x512xi32> to vector<32x512xf32>
    %110 = arith.truncf %109 : vector<32x512xf32> to vector<32x512xbf16>
    %cst_12 = arith.constant dense<0.000000e+00> : vector<8x32xf32>
    %111 = tpu.matmul %104, %110, %cst_12 {dimension_numbers = #tpu.dot_dimension_numbers<[1], [1], [0], [0], [0, 0, 1, 0], [], []>} : vector<8x512xbf16>, vector<32x512xbf16>, vector<8x32xf32> -> vector<8x32xf32>
    %112 = arith.addf %98, %111 : vector<8x32xf32>
    %113 = vector.extract_strided_slice %40 {offsets = [5, 0], sizes = [1, 512], strides = [1, 1]} : vector<8x512xi32> to vector<1x512xi32>
    %114 = vector.broadcast %113 : vector<1x512xi32> to vector<8x512xi32>
    %115 = arith.cmpi eq, %0, %114 : vector<8x512xi32>
    %116 = arith.extui %115 : vector<8x512xi1> to vector<8x512xi32>
    %117 = arith.sitofp %116 : vector<8x512xi32> to vector<8x512xf32>
    %118 = arith.truncf %117 : vector<8x512xf32> to vector<8x512xbf16>
    %119 = vector.extract_strided_slice %42 {offsets = [5, 0], sizes = [1, 512], strides = [1, 1]} : vector<8x512xi32> to vector<1x512xi32>
    %120 = vector.broadcast %119 : vector<1x512xi32> to vector<32x512xi32>
    %121 = arith.cmpi eq, %1, %120 : vector<32x512xi32>
    %122 = arith.extui %121 : vector<32x512xi1> to vector<32x512xi32>
    %123 = arith.sitofp %122 : vector<32x512xi32> to vector<32x512xf32>
    %124 = arith.truncf %123 : vector<32x512xf32> to vector<32x512xbf16>
    %cst_13 = arith.constant dense<0.000000e+00> : vector<8x32xf32>
    %125 = tpu.matmul %118, %124, %cst_13 {dimension_numbers = #tpu.dot_dimension_numbers<[1], [1], [0], [0], [0, 0, 1, 0], [], []>} : vector<8x512xbf16>, vector<32x512xbf16>, vector<8x32xf32> -> vector<8x32xf32>
    %126 = arith.addf %112, %125 : vector<8x32xf32>
    %127 = vector.extract_strided_slice %40 {offsets = [6, 0], sizes = [1, 512], strides = [1, 1]} : vector<8x512xi32> to vector<1x512xi32>
    %128 = vector.broadcast %127 : vector<1x512xi32> to vector<8x512xi32>
    %129 = arith.cmpi eq, %0, %128 : vector<8x512xi32>
    %130 = arith.extui %129 : vector<8x512xi1> to vector<8x512xi32>
    %131 = arith.sitofp %130 : vector<8x512xi32> to vector<8x512xf32>
    %132 = arith.truncf %131 : vector<8x512xf32> to vector<8x512xbf16>
    %133 = vector.extract_strided_slice %42 {offsets = [6, 0], sizes = [1, 512], strides = [1, 1]} : vector<8x512xi32> to vector<1x512xi32>
    %134 = vector.broadcast %133 : vector<1x512xi32> to vector<32x512xi32>
    %135 = arith.cmpi eq, %1, %134 : vector<32x512xi32>
    %136 = arith.extui %135 : vector<32x512xi1> to vector<32x512xi32>
    %137 = arith.sitofp %136 : vector<32x512xi32> to vector<32x512xf32>
    %138 = arith.truncf %137 : vector<32x512xf32> to vector<32x512xbf16>
    %cst_14 = arith.constant dense<0.000000e+00> : vector<8x32xf32>
    %139 = tpu.matmul %132, %138, %cst_14 {dimension_numbers = #tpu.dot_dimension_numbers<[1], [1], [0], [0], [0, 0, 1, 0], [], []>} : vector<8x512xbf16>, vector<32x512xbf16>, vector<8x32xf32> -> vector<8x32xf32>
    %140 = arith.addf %126, %139 : vector<8x32xf32>
    %141 = vector.extract_strided_slice %40 {offsets = [7, 0], sizes = [1, 512], strides = [1, 1]} : vector<8x512xi32> to vector<1x512xi32>
    %142 = vector.broadcast %141 : vector<1x512xi32> to vector<8x512xi32>
    %143 = arith.cmpi eq, %0, %142 : vector<8x512xi32>
    %144 = arith.extui %143 : vector<8x512xi1> to vector<8x512xi32>
    %145 = arith.sitofp %144 : vector<8x512xi32> to vector<8x512xf32>
    %146 = arith.truncf %145 : vector<8x512xf32> to vector<8x512xbf16>
    %147 = vector.extract_strided_slice %42 {offsets = [7, 0], sizes = [1, 512], strides = [1, 1]} : vector<8x512xi32> to vector<1x512xi32>
    %148 = vector.broadcast %147 : vector<1x512xi32> to vector<32x512xi32>
    %149 = arith.cmpi eq, %1, %148 : vector<32x512xi32>
    %150 = arith.extui %149 : vector<32x512xi1> to vector<32x512xi32>
    %151 = arith.sitofp %150 : vector<32x512xi32> to vector<32x512xf32>
    %152 = arith.truncf %151 : vector<32x512xf32> to vector<32x512xbf16>
    %cst_15 = arith.constant dense<0.000000e+00> : vector<8x32xf32>
    %153 = tpu.matmul %146, %152, %cst_15 {dimension_numbers = #tpu.dot_dimension_numbers<[1], [1], [0], [0], [0, 0, 1, 0], [], []>} : vector<8x512xbf16>, vector<32x512xbf16>, vector<8x32xf32> -> vector<8x32xf32>
    %154 = arith.addf %140, %153 : vector<8x32xf32>
    %c8_i32_16 = arith.constant 8 : i32
    %155 = arith.muli %c0_i32, %c8_i32_16 : i32
    %156 = tpu.assume_multiple %155, 8 : i32
    %c0_17 = arith.constant 0 : index
    %157 = arith.index_cast %156 : i32 to index
    %c0_18 = arith.constant 0 : index
    %158 = vector.load %arg3[%c0_17, %157, %c0_18] : memref<1x8x512xf32, #tpu.memory_space<vmem>>, vector<1x8x512xf32>
    %159 = vector.shape_cast %158 : vector<1x8x512xf32> to vector<8x512xf32>
    %cst_19 = arith.constant 2.550000e+02 : f32
    %160 = vector.broadcast %cst_19 : f32 to vector<8x512xf32>
    %161 = arith.mulf %159, %160 : vector<8x512xf32>
    %c4096_i32_20 = arith.constant 4096 : i32
    %162 = arith.muli %c0_i32, %c4096_i32_20 : i32
    %163 = arith.addi %8, %162 : i32
    %164 = vector.broadcast %163 : i32 to vector<8x512xi32>
    %165 = arith.addi %6, %164 : vector<8x512xi32>
    %166 = vector.broadcast %7 : f32 to vector<8x512xf32>
    %167 = arith.mulf %161, %166 : vector<8x512xf32>
    %168 = math.floor %167 : vector<8x512xf32>
    %169 = arith.fptosi %168 : vector<8x512xf32> to vector<8x512xi32>
    %c0_i32_21 = arith.constant 0 : i32
    %c255_i32_22 = arith.constant 255 : i32
    %170 = vector.broadcast %c0_i32_21 : i32 to vector<8x512xi32>
    %171 = arith.maxsi %170, %169 : vector<8x512xi32>
    %172 = vector.broadcast %c255_i32_22 : i32 to vector<8x512xi32>
    %173 = arith.minsi %172, %171 : vector<8x512xi32>
    %c1024_i32_23 = arith.constant 1024 : i32
    %174 = vector.broadcast %c1024_i32_23 : i32 to vector<8x512xi32>
    %175 = arith.cmpi slt, %165, %174 : vector<8x512xi32>
    %cst_24 = arith.constant 0.000000e+00 : f32
    %176 = vector.broadcast %cst_24 : f32 to vector<8x512xf32>
    %177 = arith.cmpf oge, %161, %176 : vector<8x512xf32>
    %178 = arith.andi %175, %177 : vector<8x512xi1>
    %cst_25 = arith.constant 2.550000e+02 : f32
    %179 = vector.broadcast %cst_25 : f32 to vector<8x512xf32>
    %180 = arith.cmpf ole, %161, %179 : vector<8x512xf32>
    %181 = arith.andi %178, %180 : vector<8x512xi1>
    %c5_i32_26 = arith.constant 5 : i32
    %182 = vector.broadcast %c5_i32_26 : i32 to vector<8x512xi32>
    %183 = arith.shrsi %173, %182 : vector<8x512xi32>
    %c-1_i32_27 = arith.constant -1 : i32
    %184 = vector.broadcast %c-1_i32_27 : i32 to vector<8x512xi32>
    %185 = arith.select %181, %183, %184 : vector<8x512xi1>, vector<8x512xi32>
    %c31_i32_28 = arith.constant 31 : i32
    %186 = vector.broadcast %c31_i32_28 : i32 to vector<8x512xi32>
    %187 = arith.andi %173, %186 : vector<8x512xi32>
    %188 = vector.extract_strided_slice %185 {offsets = [0, 0], sizes = [1, 512], strides = [1, 1]} : vector<8x512xi32> to vector<1x512xi32>
    %189 = vector.broadcast %188 : vector<1x512xi32> to vector<8x512xi32>
    %190 = arith.cmpi eq, %0, %189 : vector<8x512xi32>
    %191 = arith.extui %190 : vector<8x512xi1> to vector<8x512xi32>
    %192 = arith.sitofp %191 : vector<8x512xi32> to vector<8x512xf32>
    %193 = arith.truncf %192 : vector<8x512xf32> to vector<8x512xbf16>
    %194 = vector.extract_strided_slice %187 {offsets = [0, 0], sizes = [1, 512], strides = [1, 1]} : vector<8x512xi32> to vector<1x512xi32>
    %195 = vector.broadcast %194 : vector<1x512xi32> to vector<32x512xi32>
    %196 = arith.cmpi eq, %1, %195 : vector<32x512xi32>
    %197 = arith.extui %196 : vector<32x512xi1> to vector<32x512xi32>
    %198 = arith.sitofp %197 : vector<32x512xi32> to vector<32x512xf32>
    %199 = arith.truncf %198 : vector<32x512xf32> to vector<32x512xbf16>
    %cst_29 = arith.constant dense<0.000000e+00> : vector<8x32xf32>
    %200 = tpu.matmul %193, %199, %cst_29 {dimension_numbers = #tpu.dot_dimension_numbers<[1], [1], [0], [0], [0, 0, 1, 0], [], []>} : vector<8x512xbf16>, vector<32x512xbf16>, vector<8x32xf32> -> vector<8x32xf32>
    %201 = arith.addf %9, %200 : vector<8x32xf32>
    %202 = vector.extract_strided_slice %185 {offsets = [1, 0], sizes = [1, 512], strides = [1, 1]} : vector<8x512xi32> to vector<1x512xi32>
    %203 = vector.broadcast %202 : vector<1x512xi32> to vector<8x512xi32>
    %204 = arith.cmpi eq, %0, %203 : vector<8x512xi32>
    %205 = arith.extui %204 : vector<8x512xi1> to vector<8x512xi32>
    %206 = arith.sitofp %205 : vector<8x512xi32> to vector<8x512xf32>
    %207 = arith.truncf %206 : vector<8x512xf32> to vector<8x512xbf16>
    %208 = vector.extract_strided_slice %187 {offsets = [1, 0], sizes = [1, 512], strides = [1, 1]} : vector<8x512xi32> to vector<1x512xi32>
    %209 = vector.broadcast %208 : vector<1x512xi32> to vector<32x512xi32>
    %210 = arith.cmpi eq, %1, %209 : vector<32x512xi32>
    %211 = arith.extui %210 : vector<32x512xi1> to vector<32x512xi32>
    %212 = arith.sitofp %211 : vector<32x512xi32> to vector<32x512xf32>
    %213 = arith.truncf %212 : vector<32x512xf32> to vector<32x512xbf16>
    %cst_30 = arith.constant dense<0.000000e+00> : vector<8x32xf32>
    %214 = tpu.matmul %207, %213, %cst_30 {dimension_numbers = #tpu.dot_dimension_numbers<[1], [1], [0], [0], [0, 0, 1, 0], [], []>} : vector<8x512xbf16>, vector<32x512xbf16>, vector<8x32xf32> -> vector<8x32xf32>
    %215 = arith.addf %201, %214 : vector<8x32xf32>
    %216 = vector.extract_strided_slice %185 {offsets = [2, 0], sizes = [1, 512], strides = [1, 1]} : vector<8x512xi32> to vector<1x512xi32>
    %217 = vector.broadcast %216 : vector<1x512xi32> to vector<8x512xi32>
    %218 = arith.cmpi eq, %0, %217 : vector<8x512xi32>
    %219 = arith.extui %218 : vector<8x512xi1> to vector<8x512xi32>
    %220 = arith.sitofp %219 : vector<8x512xi32> to vector<8x512xf32>
    %221 = arith.truncf %220 : vector<8x512xf32> to vector<8x512xbf16>
    %222 = vector.extract_strided_slice %187 {offsets = [2, 0], sizes = [1, 512], strides = [1, 1]} : vector<8x512xi32> to vector<1x512xi32>
    %223 = vector.broadcast %222 : vector<1x512xi32> to vector<32x512xi32>
    %224 = arith.cmpi eq, %1, %223 : vector<32x512xi32>
    %225 = arith.extui %224 : vector<32x512xi1> to vector<32x512xi32>
    %226 = arith.sitofp %225 : vector<32x512xi32> to vector<32x512xf32>
    %227 = arith.truncf %226 : vector<32x512xf32> to vector<32x512xbf16>
    %cst_31 = arith.constant dense<0.000000e+00> : vector<8x32xf32>
    %228 = tpu.matmul %221, %227, %cst_31 {dimension_numbers = #tpu.dot_dimension_numbers<[1], [1], [0], [0], [0, 0, 1, 0], [], []>} : vector<8x512xbf16>, vector<32x512xbf16>, vector<8x32xf32> -> vector<8x32xf32>
    %229 = arith.addf %215, %228 : vector<8x32xf32>
    %230 = vector.extract_strided_slice %185 {offsets = [3, 0], sizes = [1, 512], strides = [1, 1]} : vector<8x512xi32> to vector<1x512xi32>
    %231 = vector.broadcast %230 : vector<1x512xi32> to vector<8x512xi32>
    %232 = arith.cmpi eq, %0, %231 : vector<8x512xi32>
    %233 = arith.extui %232 : vector<8x512xi1> to vector<8x512xi32>
    %234 = arith.sitofp %233 : vector<8x512xi32> to vector<8x512xf32>
    %235 = arith.truncf %234 : vector<8x512xf32> to vector<8x512xbf16>
    %236 = vector.extract_strided_slice %187 {offsets = [3, 0], sizes = [1, 512], strides = [1, 1]} : vector<8x512xi32> to vector<1x512xi32>
    %237 = vector.broadcast %236 : vector<1x512xi32> to vector<32x512xi32>
    %238 = arith.cmpi eq, %1, %237 : vector<32x512xi32>
    %239 = arith.extui %238 : vector<32x512xi1> to vector<32x512xi32>
    %240 = arith.sitofp %239 : vector<32x512xi32> to vector<32x512xf32>
    %241 = arith.truncf %240 : vector<32x512xf32> to vector<32x512xbf16>
    %cst_32 = arith.constant dense<0.000000e+00> : vector<8x32xf32>
    %242 = tpu.matmul %235, %241, %cst_32 {dimension_numbers = #tpu.dot_dimension_numbers<[1], [1], [0], [0], [0, 0, 1, 0], [], []>} : vector<8x512xbf16>, vector<32x512xbf16>, vector<8x32xf32> -> vector<8x32xf32>
    %243 = arith.addf %229, %242 : vector<8x32xf32>
    %244 = vector.extract_strided_slice %185 {offsets = [4, 0], sizes = [1, 512], strides = [1, 1]} : vector<8x512xi32> to vector<1x512xi32>
    %245 = vector.broadcast %244 : vector<1x512xi32> to vector<8x512xi32>
    %246 = arith.cmpi eq, %0, %245 : vector<8x512xi32>
    %247 = arith.extui %246 : vector<8x512xi1> to vector<8x512xi32>
    %248 = arith.sitofp %247 : vector<8x512xi32> to vector<8x512xf32>
    %249 = arith.truncf %248 : vector<8x512xf32> to vector<8x512xbf16>
    %250 = vector.extract_strided_slice %187 {offsets = [4, 0], sizes = [1, 512], strides = [1, 1]} : vector<8x512xi32> to vector<1x512xi32>
    %251 = vector.broadcast %250 : vector<1x512xi32> to vector<32x512xi32>
    %252 = arith.cmpi eq, %1, %251 : vector<32x512xi32>
    %253 = arith.extui %252 : vector<32x512xi1> to vector<32x512xi32>
    %254 = arith.sitofp %253 : vector<32x512xi32> to vector<32x512xf32>
    %255 = arith.truncf %254 : vector<32x512xf32> to vector<32x512xbf16>
    %cst_33 = arith.constant dense<0.000000e+00> : vector<8x32xf32>
    %256 = tpu.matmul %249, %255, %cst_33 {dimension_numbers = #tpu.dot_dimension_numbers<[1], [1], [0], [0], [0, 0, 1, 0], [], []>} : vector<8x512xbf16>, vector<32x512xbf16>, vector<8x32xf32> -> vector<8x32xf32>
    %257 = arith.addf %243, %256 : vector<8x32xf32>
    %258 = vector.extract_strided_slice %185 {offsets = [5, 0], sizes = [1, 512], strides = [1, 1]} : vector<8x512xi32> to vector<1x512xi32>
    %259 = vector.broadcast %258 : vector<1x512xi32> to vector<8x512xi32>
    %260 = arith.cmpi eq, %0, %259 : vector<8x512xi32>
    %261 = arith.extui %260 : vector<8x512xi1> to vector<8x512xi32>
    %262 = arith.sitofp %261 : vector<8x512xi32> to vector<8x512xf32>
    %263 = arith.truncf %262 : vector<8x512xf32> to vector<8x512xbf16>
    %264 = vector.extract_strided_slice %187 {offsets = [5, 0], sizes = [1, 512], strides = [1, 1]} : vector<8x512xi32> to vector<1x512xi32>
    %265 = vector.broadcast %264 : vector<1x512xi32> to vector<32x512xi32>
    %266 = arith.cmpi eq, %1, %265 : vector<32x512xi32>
    %267 = arith.extui %266 : vector<32x512xi1> to vector<32x512xi32>
    %268 = arith.sitofp %267 : vector<32x512xi32> to vector<32x512xf32>
    %269 = arith.truncf %268 : vector<32x512xf32> to vector<32x512xbf16>
    %cst_34 = arith.constant dense<0.000000e+00> : vector<8x32xf32>
    %270 = tpu.matmul %263, %269, %cst_34 {dimension_numbers = #tpu.dot_dimension_numbers<[1], [1], [0], [0], [0, 0, 1, 0], [], []>} : vector<8x512xbf16>, vector<32x512xbf16>, vector<8x32xf32> -> vector<8x32xf32>
    %271 = arith.addf %257, %270 : vector<8x32xf32>
    %272 = vector.extract_strided_slice %185 {offsets = [6, 0], sizes = [1, 512], strides = [1, 1]} : vector<8x512xi32> to vector<1x512xi32>
    %273 = vector.broadcast %272 : vector<1x512xi32> to vector<8x512xi32>
    %274 = arith.cmpi eq, %0, %273 : vector<8x512xi32>
    %275 = arith.extui %274 : vector<8x512xi1> to vector<8x512xi32>
    %276 = arith.sitofp %275 : vector<8x512xi32> to vector<8x512xf32>
    %277 = arith.truncf %276 : vector<8x512xf32> to vector<8x512xbf16>
    %278 = vector.extract_strided_slice %187 {offsets = [6, 0], sizes = [1, 512], strides = [1, 1]} : vector<8x512xi32> to vector<1x512xi32>
    %279 = vector.broadcast %278 : vector<1x512xi32> to vector<32x512xi32>
    %280 = arith.cmpi eq, %1, %279 : vector<32x512xi32>
    %281 = arith.extui %280 : vector<32x512xi1> to vector<32x512xi32>
    %282 = arith.sitofp %281 : vector<32x512xi32> to vector<32x512xf32>
    %283 = arith.truncf %282 : vector<32x512xf32> to vector<32x512xbf16>
    %cst_35 = arith.constant dense<0.000000e+00> : vector<8x32xf32>
    %284 = tpu.matmul %277, %283, %cst_35 {dimension_numbers = #tpu.dot_dimension_numbers<[1], [1], [0], [0], [0, 0, 1, 0], [], []>} : vector<8x512xbf16>, vector<32x512xbf16>, vector<8x32xf32> -> vector<8x32xf32>
    %285 = arith.addf %271, %284 : vector<8x32xf32>
    %286 = vector.extract_strided_slice %185 {offsets = [7, 0], sizes = [1, 512], strides = [1, 1]} : vector<8x512xi32> to vector<1x512xi32>
    %287 = vector.broadcast %286 : vector<1x512xi32> to vector<8x512xi32>
    %288 = arith.cmpi eq, %0, %287 : vector<8x512xi32>
    %289 = arith.extui %288 : vector<8x512xi1> to vector<8x512xi32>
    %290 = arith.sitofp %289 : vector<8x512xi32> to vector<8x512xf32>
    %291 = arith.truncf %290 : vector<8x512xf32> to vector<8x512xbf16>
    %292 = vector.extract_strided_slice %187 {offsets = [7, 0], sizes = [1, 512], strides = [1, 1]} : vector<8x512xi32> to vector<1x512xi32>
    %293 = vector.broadcast %292 : vector<1x512xi32> to vector<32x512xi32>
    %294 = arith.cmpi eq, %1, %293 : vector<32x512xi32>
    %295 = arith.extui %294 : vector<32x512xi1> to vector<32x512xi32>
    %296 = arith.sitofp %295 : vector<32x512xi32> to vector<32x512xf32>
    %297 = arith.truncf %296 : vector<32x512xf32> to vector<32x512xbf16>
    %cst_36 = arith.constant dense<0.000000e+00> : vector<8x32xf32>
    %298 = tpu.matmul %291, %297, %cst_36 {dimension_numbers = #tpu.dot_dimension_numbers<[1], [1], [0], [0], [0, 0, 1, 0], [], []>} : vector<8x512xbf16>, vector<32x512xbf16>, vector<8x32xf32> -> vector<8x32xf32>
    %299 = arith.addf %285, %298 : vector<8x32xf32>
    %c1_i32 = arith.constant 1 : i32
    %c0_37 = arith.constant 0 : index
    %c0_38 = arith.constant 0 : index
    %c0_39 = arith.constant 0 : index
    %c0_40 = arith.constant 0 : index
    %300 = vector.load %arg4[%c0_37, %c0_38, %c0_39, %c0_40] : memref<1x1x8x32xf32, #tpu.memory_space<vmem>>, vector<1x1x8x32xf32>
    %301 = vector.shape_cast %300 : vector<1x1x8x32xf32> to vector<8x32xf32>
    %302 = vector.shape_cast %154 : vector<8x32xf32> to vector<1x1x8x32xf32>
    tpu.vector_store %arg4[%c0_37, %c0_38, %c0_39, %c0_40], %302 {strides = array<i32>} : memref<1x1x8x32xf32, #tpu.memory_space<vmem>>, vector<1x1x8x32xf32>,
    %c0_41 = arith.constant 0 : index
    %c0_42 = arith.constant 0 : index
    %c0_43 = arith.constant 0 : index
    %c0_44 = arith.constant 0 : index
    %303 = vector.load %arg5[%c0_41, %c0_42, %c0_43, %c0_44] : memref<1x1x8x32xf32, #tpu.memory_space<vmem>>, vector<1x1x8x32xf32>
    %304 = vector.shape_cast %303 : vector<1x1x8x32xf32> to vector<8x32xf32>
    %305 = vector.shape_cast %299 : vector<8x32xf32> to vector<1x1x8x32xf32>
    tpu.vector_store %arg5[%c0_41, %c0_42, %c0_43, %c0_44], %305 {strides = array<i32>} : memref<1x1x8x32xf32, #tpu.memory_space<vmem>>, vector<1x1x8x32xf32>,
    return
  }
  func.func @transform_0(%arg0: i32, %arg1: i32) -> (i32, i32, i32) {
    %c0_i32 = arith.constant 0 : i32
    %c0_i32_0 = arith.constant 0 : i32
    return %arg0, %arg1, %c0_i32 : i32, i32, i32
  }
  func.func @transform_1(%arg0: i32, %arg1: i32) -> (i32, i32, i32) {
    %c0_i32 = arith.constant 0 : i32
    %c0_i32_0 = arith.constant 0 : i32
    return %arg0, %arg1, %c0_i32 : i32, i32, i32
  }
  func.func @transform_2(%arg0: i32, %arg1: i32) -> (i32, i32, i32, i32) {
    %c0_i32 = arith.constant 0 : i32
    %c0_i32_0 = arith.constant 0 : i32
    %c0_i32_1 = arith.constant 0 : i32
    return %arg0, %arg1, %c0_i32, %c0_i32_0 : i32, i32, i32, i32
  }
  func.func @transform_3(%arg0: i32, %arg1: i32) -> (i32, i32, i32, i32) {
    %c0_i32 = arith.constant 0 : i32
    %c0_i32_0 = arith.constant 0 : i32
    %c0_i32_1 = arith.constant 0 : i32
    return %arg0, %arg1, %c0_i32, %c0_i32_0 : i32, i32, i32, i32
  }
}

</mosaic_0001>

<bundles_post_ra>
// kernel: tpu_custom_call.1
= control target key start
LH: loop header
LB: loop body
LE: loop exit
PB: predicated region body
PF: predicated region fallthrough
CT: control target
= control target key end

     0   :  { %9 = vsyncpa [#allocation3], 0  ;;  %s5615_s0 = inlined_call_operand.hbm [shape: f32[2,8,512], index: 0, kind: input, shape index: {}]   ;;  %s5616_s1 = inlined_call_operand.hbm [shape: f32[2,8,512], index: 1, kind: input, shape index: {}]   ;;  %s5617_s2 = inlined_call_operand.hbm [shape: f32[2,1,8,32], index: 2, kind: output, shape index: {0}]   ;;  %s5618_s3 = inlined_call_operand.hbm [shape: f32[2,1,8,32], index: 3, kind: output, shape index: {1}]  }
   0x1   :  { %11 = vsyncpa [#allocation3 + $0x1], 0 }
   0x2   :  { %12 = vsyncpa [#allocation6], 0 }
   0x3   :  { %14 = vsyncpa [#allocation6 + $0x1], 0 }
   0x4   :  { %15 = vsyncpa [#allocation4], 0 }
   0x5   :  { %17 = vsyncpa [#allocation4 + $0x1], 0 }
   0x6   :  { %18 = vsyncpa [#allocation9], 0 }
   0x7   :  { %20 = vsyncpa [#allocation9 + $0x1], 0  ;;  %s3746_s12 = smov 0   ;;  %s3748_s13 = smov 0  }
   0x8   :  { %s3750_s14 = smov 0   ;;  %s3752_s15 = smov 0  }
   0x9   :  { %s3754_s16 = smov 0   ;;  %s3756_s17 = smov 0  }
   0xa LB: > { %s2729_s18 = sadd.s32 4294967295, %s3723_s17   ;;  %s2730_s19 = sadd.s32 4294967294, %s3723_s17   ;;  %s3723_s17 = sphi %s3756_s17, %s26_s17   ;;  %s3719_s16 = sphi %s3754_s16, %s5908_s16   ;;  %s3715_s15 = sphi %s3752_s15, %s5907_s15   ;;  %s3711_s14 = sphi %s3750_s14, %s5906_s14   ;;  %s3707_s13 = sphi %s3748_s13, %s5905_s13   ;;  %s3703_s12 = sphi %s3746_s12, %s5904_s12  }
   0xb   : > { %s38_s20 = sadd.s32 1, %s3719_s16  ;;  %s47_s21 = sadd.s32 1, %s3711_s14 }
   0xc   : > { %p40_p0 = scmp.ge.s32.totalorder %s38_s20, 2  ;;  %p54_p1 = scmp.ne.s32.totalorder %s3711_s14, %s3707_s13 }
   0xd   : > { %p55_p2 = scmp.eq.s32.totalorder %s3723_s17, 0  ;;  %p60_p3 = scmp.ne.s32.totalorder %s3707_s13, %s3703_s12 }
   0xe   : > { %s5910_s20 = smov (%p40_p0, %s38_s20), 0  ;;  %p61_p5 = scmp.eq.s32.totalorder %s2729_s18, 0 }
   0xf   : > { %p3787_p4 = por %p55_p2, %p54_p1  ;;  %s42_s23 = ssub.s32 %s3719_s16, %s5910_s20 }
  0x10   : > { %p114_p6 = scmp.eq.s32.totalorder %s2729_s18, 1  ;;  %p45_p7 = scmp.eq.s32.totalorder %s42_s23, 0 }
  0x11   : > { %p3793_p8 = por %p61_p5, %p60_p3  ;;  %p120_p10 = scmp.eq.s32.totalorder %s2730_s19, 1 }
  0x12   : > { %p3797_p9 = por %p114_p6, %p54_p1  ;;  %p2732_p12 = scmp.ge.s32.totalorder %s3723_s17, 2 }
  0x13   : > { %s3802_s26 = scalar_select %p45_p7, %s3711_s14, %s47_s21  }
  0x14   : > { %p3804_p11 = por %p120_p10, %p60_p3  ;;  %p3494_p13 = scmp.lt.s32.totalorder %s3723_s17, 2 }
  0x15   : > { %s168_s28 = sand.u32 1, %s3711_s14   ;;  %s3454_s30 = sshll.u32 %s3719_s16, 5 }
  0x16   : > { %s2733_s29 = sshll.u32 %s168_s28, 5  ;;  %s179_s6 = scalar_lea.hbm %s5615_s0, %s3454_s30 }
  0x17   : > { %s172_s7 = scalar_lea.vmem [#allocation2], %s2733_s29  ;;  %s181_s9 = sshll.u32 %s179_s6, 4  ;;  %s182_s9 = int_to_ptr.hbm [resolvable:$true] %s181_s9 }
  0x18   : > { %s183_s8 = sshll.u32 %s172_s7, 4  ;;  %p3481_p0 = pnand %p3494_p13, %p3787_p4  ;;  %s184_s8 = int_to_ptr.vmem [resolvable:$true] %s183_s8 }
  0x19   : > { %p2739_p1 = scmp.ge.s32.totalorder %s3723_s17, 1  ;;  %p210_p2 = scmp.lt.s32.totalorder %s3723_s17, 3 }
  0x1a   : > { %s169_s10 = scalar_lea.sflag [#allocation3], %s168_s28  ;;  %s201_s19 = scalar_lea.hbm %s5616_s1, %s3454_s30 }
  0x1b   : > { %3483 = dma.hbm_to_vmem [thread:$0]  (!%p3481_p0), %s182_s9, 512, %s184_s8, %s169_s10  }
  0x1c   : > { %p211_p3 = pnand %p2739_p1, %p210_p2  ;;  %s194_s21 = scalar_lea.vmem [#allocation5], %s2733_s29 }
  0x1d   : > { %s205_s23 = sshll.u32 %s194_s21, 4  ;;  %s203_s4 = sshll.u32 %s201_s19, 4  ;;  %s206_s23 = int_to_ptr.vmem [resolvable:$true] %s205_s23  ;;  %s204_s4 = int_to_ptr.hbm [resolvable:$true] %s203_s4 }
  0x1e   : > { %s191_s5 = scalar_lea.sflag [#allocation6], %s168_s28  ;;  %214 = sbr.rel (%p211_p3) target bundleno = 472 (0x1d8), region = 28 }
  0x1f   : > { %3486 = dma.hbm_to_vmem [thread:$0]  (!%p3481_p0), %s204_s4, 512, %s206_s23, %s191_s5  }
  0x20   : > { %s3823_s22 = sand.u32 (!%p211_p3), 1, %s3707_s13  }
  0x21   : > { %s2740_s6 = sshll.u32 (!%p211_p3), %s3823_s22, 5  ;;  %s217_s7 = scalar_lea.sflag (!%p211_p3), [#allocation3], %s3823_s22 }
  0x22   : > { %s220_s8 = scalar_lea.vmem (!%p211_p3), [#allocation2], %s2740_s6 }
  0x23   : > { %3686 = dma.done.wait (%p3793_p8), %s217_s7, 512  }
  0x24   : > { %3688 = vsyncadd (%p3793_p8), %s217_s7, 4294966784  ;;  %s227_s29 = scalar_lea.sflag [#allocation6], %s3823_s22  ;;  %s3832_s28 = scalar_lea.vmem [#allocation5], %s2740_s6 }
  0x25   : > { %3690 = dma.done.wait (%p3793_p8), %s227_s29, 512  }
  0x26   : > { %3692 = vsyncadd (%p3793_p8), %s227_s29, 4294966784  ;;  %v265_v0 = vlaneseq  ;;  %v284_v6 = vld [vmem:[%s220_s8] sm:$0xff]  ;;  %v285_v7 = vld [vmem:[%s220_s8 + $0x8] sm:$0xff]  ;;  %v3725_v54 = vmov 1.0|1.0   ;;  %v5795_v53 = vmov 0 }
  0x27   : > { %v286_v8 = vld [vmem:[%s220_s8 + $0x10] sm:$0xff]  ;;  %v288_v9 = vmul.f32 255.0, %v284_v6  ;;  %v289_v10 = vmul.f32 255.0, %v285_v7  ;;  %v287_v12 = vld [vmem:[%s220_s8 + $0x18] sm:$0xff]  ;;  %s2742_s24 = sshll.u32 %s3823_s22, 3  ;;  %s3450_s30 = sshll.u32 %s3715_s15, 3 }
  0x28   : > { %v3838_v1 = vand.u32 127, %v265_v0  ;;  %v3840_v2 = vshrl.u32 %v265_v0, 7  ;;  %v3847_v11 = vmul.f32 255.0, %v286_v8  ;;  %v3849_v13 = vmul.f32 255.0, %v287_v12  ;;  %v1423_v7 = vld [vmem:[%s3832_s28 + $0x10] sm:$0xff]  ;;  %s256_s9 = scalar_lea.vmem [#allocation7], %s2742_s24  ;;  %s2567_s18 = scalar_lea.hbm %s5617_s2, %s3450_s30 }
  0x29   : > { %v297_v17 = vmul.f32 1.0039216, %v288_v9  ;;  %v298_v18 = vmul.f32 1.0039216, %v289_v10  ;;  %vm329_vm3 = vcmp.ge.f32.partialorder %v288_v9, 0.0  ;;  %vm337_vm4 = vcmp.le.f32.partialorder %v288_v9, 255.0 }
  0x2a   : > { %v3843_v3 = vmul.u32 512, %v3840_v2  ;;  %v273_v4 = vadd.s32 128, %v3838_v1  ;;  %v274_v5 = vadd.s32 256, %v3838_v1  ;;  %v299_v19 = vmul.f32 1.0039216, %v3847_v11  ;;  %s2569_s19 = sshll.u32 %s256_s9, 4  ;;  %s2570_s19 = int_to_ptr.vmem [resolvable:$true] %s2569_s19 }
  0x2b   : > { %v3863_v20 = vadd.s32 16, %v3840_v2  ;;  %v300_v21 = vmul.f32 1.0039216, %v3849_v13  ;;  %v3867_v22 = vadd.s32 24, %v3840_v2  ;;  %v301_v23 = vfloor.f32 %v297_v17  ;;  %s2571_s21 = sshll.u32 %s2567_s18, 4  ;;  %s2551_s23 = scalar_lea.sflag [#allocation4], %s3823_s22  ;;  %s2572_s21 = int_to_ptr.hbm [resolvable:$true] %s2571_s21 }
  0x2c   : > { %v3853_v14 = vadd.s32 %v3838_v1, %v3843_v3  ;;  %v3856_v15 = vadd.s32 %v273_v4, %v3843_v3  ;;  %v3859_v16 = vadd.s32 %v274_v5, %v3843_v3  ;;  %v302_v24 = vfloor.f32 %v298_v18  ;;  %s3619_s4 = sshra.s32 %s2572_s21, 4  ;;  %s3625_s8 = scalar_lea.hbm %s5617_s2, 16  ;;  %s3620_s4 = int_to_ptr.hbm [resolvable:$true] %s3619_s4 }
  0x2d   : > { %v303_v25 = vfloor.f32 %v299_v19  ;;  %v304_v26 = vfloor.f32 %v300_v21  ;;  %v3457_v27 = vcvt.f32.s32 %v301_v23  ;;  %vm330_vm5 = vcmp.ge.f32.partialorder %v289_v10, 0.0  ;;  %s3621_s5 = scalar_lea.hbm %s3620_s4, 8  ;;  %p3626_p7 = scmp.lt.s32.totalorder %s3620_s4, %s5617_s2 }
  0x2e   : > { %vm5621_vm0 = vcmp.lt.s32.totalorder %v3853_v14, 1024  ;;  %vm5620_vm1 = vcmp.lt.s32.totalorder %v3856_v15, 1024  ;;  %vm5619_vm2 = vcmp.lt.s32.totalorder %v3859_v16, 1024  ;;  %v3459_v28 = vcvt.f32.s32 %v302_v24  ;;  %p3622_p4 = scmp.ne.s32.totalorder %s3620_s4, %s3621_s5  ;;  %p3627_p8 = scmp.lt.s32.totalorder %s3625_s8, %s3621_s5 }
  0x2f   : > { %v3461_v29 = vcvt.f32.s32 %v303_v25  ;;  %v3463_v30 = vcvt.f32.s32 %v304_v26  ;;  %vm309_vm7 = vcmp.gt.s32.totalorder %v3457_v27, 0  ;;  %vm331_vm10 = vcmp.ge.f32.partialorder %v3847_v11, 0.0  ;;  %vm333_vm6 = vmand %vm5621_vm0, %vm329_vm3 }
  0x30   : > { %vm311_vm8 = vcmp.gt.s32.totalorder %v3459_v28, 0  ;;  %v310_v31 = vsel %vm309_vm7, %v3457_v27, 0  ;;  %vm334_vm7 = vmand %vm5620_vm1, %vm330_vm5  ;;  %v3909_v50 = vadd.s32 8, %v3840_v2  ;;  %v275_v57 = vadd.s32 384, %v3838_v1  ;;  %p3623_p5 = pnand %p3622_p4, %p3797_p9  ;;  %p3628_p10 = por %p3627_p8, %p3626_p7 }
  0x31   : > { %vm313_vm9 = vcmp.gt.s32.totalorder %v3461_v29, 0  ;;  %v312_v32 = vsel %vm311_vm8, %v3459_v28, 0  ;;  %vm315_vm11 = vcmp.gt.s32.totalorder %v3463_v30, 0  ;;  %vm317_vm12 = vcmp.lt.s32.totalorder %v310_v31, 255  ;;  %vm3894_vm3 = vmand %vm5619_vm2, %vm331_vm10 }
  0x32   : > { %v314_v33 = vsel %vm313_vm9, %v3461_v29, 0  ;;  %vm319_vm13 = vcmp.lt.s32.totalorder %v312_v32, 255  ;;  %v316_v34 = vsel %vm315_vm11, %v3463_v30, 0  ;;  %v318_v35 = vsel %vm317_vm12, %v310_v31, 255  ;;  %vm3903_vm5 = vmand %vm333_vm6, %vm337_vm4  ;;  %p3624_p6 = pneg %p3623_p5 }
  0x33   : > { %vm321_vm14 = vcmp.lt.s32.totalorder %v314_v33, 255  ;;  %v320_v36 = vsel %vm319_vm13, %v312_v32, 255  ;;  %vm323_vm15 = vcmp.lt.s32.totalorder %v316_v34, 255  ;;  %v3876_v38 = vand.u32 31, %v318_v35 }
  0x34   : > { %v322_v37 = vsel %vm321_vm14, %v314_v33, 255  ;;  %v3878_v39 = vand.u32 31, %v320_v36  ;;  %v3882_v41 = vsel %vm323_vm15, %v316_v34, 255  ;;  %vm339_vm8 = vcmp.le.f32.partialorder %v3847_v11, 255.0  ;;  %p3629_p13 = pnand %p3628_p10, %p3624_p6 }
  0x35   : > { %v3880_v40 = vand.u32 31, %v322_v37  ;;  %v3888_v42 = vand.u32 31, %v3882_v41  ;;  %v457_v44 = vperm.slane %v3876_v38, 1  ;;  %v345_v48 = vshra.s32 %v318_v35, 5  ;;  %vm3922_vm13 = vmand %vm3894_vm3, %vm339_vm8 }
  0x36   : > { %v458_v45 = vperm.slane %v3878_v39, 1  ;;  %vm5658_vm9 = vcmp.le.f32.partialorder %v289_v10, 255.0  ;;  %v346_v52 = vshra.s32 %v320_v36, 5  ;;  %v347_v59 = vshra.s32 %v322_v37, 5 }
  0x37   : > { %v459_v46 = vperm.slane %v3880_v40, 1  ;;  %v460_v49 = vperm.slane %v3888_v42, 1  ;;  %vm3912_vm10 = vmand %vm334_vm7, %vm5658_vm9  ;;  %vm469_vm11 = vcmp.eq.s32.totalorder %v3863_v20, %v457_v44  ;;  %vm473_vm12 = vcmp.eq.s32.totalorder %v3867_v22, %v457_v44 }
  0x38   : > { %vm470_vm4 = vcmp.eq.s32.totalorder %v3863_v20, %v458_v45  ;;  %vm474_vm6 = vcmp.eq.s32.totalorder %v3867_v22, %v458_v45  ;;  %vm2784_vm14 = vmpackc.low %vm473_vm12, %vm469_vm11  ;;  %v3933_v55 = vsel %vm3903_vm5, %v345_v48, 4294967295  ;;  %v3938_v56 = vsel %vm3912_vm10, %v346_v52, 4294967295 }
  0x39   : > { %vm471_vm15 = vcmp.eq.s32.totalorder %v3863_v20, %v459_v46  ;;  %vm475_vm7 = vcmp.eq.s32.totalorder %v3867_v22, %v459_v46  ;;  %vm472_vm9 = vcmp.eq.s32.totalorder %v3863_v20, %v460_v49  ;;  %vm476_vm2 = vcmp.eq.s32.totalorder %v3867_v22, %v460_v49  ;;  %2785 = vmatpush.bf16.xpose.msk.msra.mxu0 %vm2784_vm14, %v3725_v54  ;;  %vm2790_vm1 = vmpackc.low %vm474_vm6, %vm470_vm4 }
  0x3a   : > { %2791 = vmatpush.bf16.xpose.msk.msra.mxu1 %vm2790_vm1, %v3725_v54  ;;  %vm2796_vm3 = vmpackc.low %vm475_vm7, %vm471_vm15  ;;  %vm461_vm11 = vcmp.eq.s32.totalorder %v3840_v2, %v457_v44  ;;  %vm465_vm12 = vcmp.eq.s32.totalorder %v3909_v50, %v457_v44  ;;  %vm462_vm5 = vcmp.eq.s32.totalorder %v3840_v2, %v458_v45  ;;  %vm466_vm1 = vcmp.eq.s32.totalorder %v3909_v50, %v458_v45 }
  0x3b   : > { %2797 = vmatpush.bf16.xpose.msk.msra.mxu2 %vm2796_vm3, %v3725_v54  ;;  %vm2802_vm8 = vmpackc.low %vm476_vm2, %vm472_vm9  ;;  %v437_v58 = vperm.slane %v3933_v55, 1  ;;  %vm463_vm10 = vcmp.eq.s32.totalorder %v3840_v2, %v459_v46  ;;  %vm467_vm4 = vcmp.eq.s32.totalorder %v3909_v50, %v459_v46  ;;  %v438_v60 = vperm.slane %v3938_v56, 1 }
  0x3c   : > { %2803 = vmatpush.bf16.xpose.msk.msra.mxu3 %vm2802_vm8, %v3725_v54  ;;  %vm2786_vm2 = vmpackc.low %vm465_vm12, %vm461_vm11  ;;  %vm464_vm6 = vcmp.eq.s32.totalorder %v3840_v2, %v460_v49  ;;  %vm468_vm14 = vcmp.eq.s32.totalorder %v3909_v50, %v460_v49  ;;  %v3955_v61 = vsel %vm3922_vm13, %v347_v59, 4294967295  ;;  %v3958_v62 = vadd.s32 %v275_v57, %v3843_v3 }
  0x3d   : > { %vm2792_vm15 = vmpackc.low %vm466_vm1, %vm462_vm5  ;;  %vm3961_vm9 = vcmp.eq.s32.totalorder %v3840_v2, %v437_v58  ;;  %v439_v0 = vperm.slane %v3955_v61, 1  ;;  %vm3968_vm8 = vcmp.eq.s32.totalorder %v3840_v2, %v438_v60  ;;  %v379_v3 = vperm.slane %v3880_v40, 0 }
  0x3e   : > { %vm2798_vm7 = vmpackc.low %vm467_vm4, %vm463_vm10  ;;  %vm5622_vm13 = vcmp.lt.s32.totalorder %v3958_v62, 1024  ;;  %vm332_vm11 = vcmp.ge.f32.partialorder %v3849_v13, 0.0  ;;  %v380_v4 = vperm.slane %v3888_v42, 0  ;;  %vm340_vm5 = vcmp.le.f32.partialorder %v3849_v13, 255.0 }
  0x3f   : > { %vm2804_vm3 = vmpackc.low %vm468_vm14, %vm464_vm6  ;;  %v348_v5 = vshra.s32 %v3882_v41, 5  ;;  %v377_v6 = vperm.slane %v3876_v38, 0  ;;  %vm3989_vm10 = vcmp.eq.s32.totalorder %v3840_v2, %v439_v0  ;;  %vm395_vm6 = vcmp.eq.s32.totalorder %v3867_v22, %v379_v3 }
  0x40   : > { %vm2788_vm12 = vmpackc.low %vm3961_vm9, %vm3961_vm9  ;;  %v378_v8 = vperm.slane %v3878_v39, 0  ;;  %v357_v11 = vperm.slane %v3933_v55, 0  ;;  %v358_v12 = vperm.slane %v3938_v56, 0  ;;  %v359_v13 = vperm.slane %v3955_v61, 0 }
  0x41   : > { %2787 = vmatpush.bf16.xpose.msk.msra.mxu0 %vm2786_vm2, %v3725_v54  ;;  %vm2794_vm1 = vmpackc.low %vm3968_vm8, %vm3968_vm8  ;;  %vm391_vm2 = vcmp.eq.s32.totalorder %v3863_v20, %v379_v3  ;;  %vm389_vm0 = vcmp.eq.s32.totalorder %v3863_v20, %v377_v6  ;;  %vm383_vm8 = vcmp.eq.s32.totalorder %v3840_v2, %v379_v3  ;;  %v643_v17 = vperm.slane %v3880_v40, 2 }
  0x42   : > { %2793 = vmatpush.bf16.xpose.msk.msra.mxu1 %vm2792_vm15, %v3725_v54  ;;  %vm336_vm4 = vmand %vm5622_vm13, %vm332_vm11  ;;  %vm392_vm15 = vcmp.eq.s32.totalorder %v3863_v20, %v380_v4  ;;  %vm393_vm11 = vcmp.eq.s32.totalorder %v3867_v22, %v377_v6  ;;  %v644_v19 = vperm.slane %v3888_v42, 2  ;;  %v5671_v21 = vmov 0 }
  0x43   : > { %2799 = vmatpush.bf16.xpose.msk.msra.mxu2 %vm2798_vm7, %v3725_v54  ;;  %vm344_vm14 = vmand %vm336_vm4, %vm340_vm5  ;;  %vm396_vm7 = vcmp.eq.s32.totalorder %v3867_v22, %v380_v4  ;;  %vm390_vm4 = vcmp.eq.s32.totalorder %v3863_v20, %v378_v8  ;;  %v641_v23 = vperm.slane %v3876_v38, 2  ;;  %v5673_v24 = vmov 0 }
  0x44   : > { %2805 = vmatpush.bf16.xpose.msk.msra.mxu3 %vm2804_vm3, %v3725_v54  ;;  %vm2800_vm3 = vmpackc.low %vm3989_vm10, %vm3989_vm10  ;;  %v4003_v9 = vsel %vm344_vm14, %v348_v5, 4294967295  ;;  %vm394_vm14 = vcmp.eq.s32.totalorder %v3867_v22, %v378_v8  ;;  %v642_v25 = vperm.slane %v3878_v39, 2  ;;  %v621_v28 = vperm.slane %v3933_v55, 2  ;;  %v1421_v5 = vld [vmem:[%s3832_s28] sm:$0xff] }
  0x45   : > { %v440_v10 = vperm.slane %v4003_v9, 1  ;;  %vm2820_vm5 = vmpackc.low %vm395_vm6, %vm391_vm2  ;;  %v360_v26 = vperm.slane %v4003_v9, 0  ;;  %v622_v29 = vperm.slane %v3938_v56, 2  ;;  %v776_v30 = vperm.slane %v3880_v40, 3 }
  0x46   : > { %vm2826_vm10 = vmpackc.low %vm396_vm7, %vm392_vm15  ;;  %vm384_vm15 = vcmp.eq.s32.totalorder %v3840_v2, %v380_v4  ;;  %vm388_vm7 = vcmp.eq.s32.totalorder %v3909_v50, %v380_v4  ;;  %vm658_vm13 = vcmp.eq.s32.totalorder %v3867_v22, %v642_v25  ;;  %v777_v31 = vperm.slane %v3888_v42, 3 }
  0x47   : > { %vm444_vm9 = vcmp.eq.s32.totalorder %v3840_v2, %v440_v10  ;;  %vm2814_vm6 = vmpackc.low %vm394_vm14, %vm390_vm4  ;;  %vm4042_vm14 = vcmp.eq.s32.totalorder %v3840_v2, %v357_v11  ;;  %v774_v32 = vperm.slane %v3876_v38, 3  ;;  %v775_v34 = vperm.slane %v3878_v39, 3  ;;  %v1422_v10 = vld [vmem:[%s3832_s28 + $0x8] sm:$0xff] }
  0x48   : > { %2789 = vmatmul.msk.bf16.vlgmr.msra.gmra.mxu0 %vm2788_vm12, %v3725_v54  ;;  %vm2808_vm12 = vmpackc.low %vm393_vm11, %vm389_vm0  ;;  %vm381_vm0 = vcmp.eq.s32.totalorder %v3840_v2, %v377_v6  ;;  %v623_v36 = vperm.slane %v3955_v61, 2  ;;  %v624_v37 = vperm.slane %v4003_v9, 2  ;;  %v909_v44 = vperm.slane %v3880_v40, 4 }
  0x49   : > { %2795 = vmatmul.msk.bf16.vlgmr.msra.gmra.mxu1 %vm2794_vm1, %v3725_v54  ;;  %vm2806_vm2 = vmpackc.low %vm444_vm9, %vm444_vm9  ;;  %2809 = vmatpush.bf16.xpose.msk.msrb.mxu0 %vm2808_vm12, %v3725_v54  ;;  %vm387_vm1 = vcmp.eq.s32.totalorder %v3909_v50, %v379_v3  ;;  %vm4048_vm12 = vcmp.eq.s32.totalorder %v3840_v2, %v358_v12  ;;  %v910_v45 = vperm.slane %v3888_v42, 4  ;;  %v907_v46 = vperm.slane %v3876_v38, 4 }
  0x4a   : > { %2801 = vmatmul.msk.bf16.vlgmr.msra.gmra.mxu2 %vm2800_vm3, %v3725_v54  ;;  %2815 = vmatpush.bf16.xpose.msk.msrb.mxu1 %vm2814_vm6, %v3725_v54  ;;  %vm385_vm3 = vcmp.eq.s32.totalorder %v3909_v50, %v377_v6  ;;  %vm2822_vm11 = vmpackc.low %vm387_vm1, %vm383_vm8  ;;  %v5672_v21 = vsel %vm4048_vm12, 4294967295, %v5671_v21  ;;  %vm4055_vm8 = vcmp.eq.s32.totalorder %v3840_v2, %v359_v13  ;;  %vm655_vm6 = vcmp.eq.s32.totalorder %v3863_v20, %v643_v17  ;;  %v1424_v13 = vld [vmem:[%s3832_s28 + $0x18] sm:$0xff] }
  0x4b   : > { %2821 = vmatpush.bf16.xpose.msk.msrb.mxu2 %vm2820_vm5, %v3725_v54  ;;  %2807 = vmatmul.msk.bf16.vlgmr.msra.gmra.mxu3 %vm2806_vm2, %v3725_v54  ;;  %vm382_vm5 = vcmp.eq.s32.totalorder %v3840_v2, %v378_v8  ;;  %vm2828_vm4 = vmpackc.low %vm388_vm7, %vm384_vm15  ;;  %v5674_v24 = vsel %vm4055_vm8, 4294967295, %v5673_v24  ;;  %vm659_vm15 = vcmp.eq.s32.totalorder %v3867_v22, %v643_v17  ;;  %vm4082_vm7 = vcmp.eq.s32.totalorder %v3840_v2, %v360_v26 }
  0x4c   : > { %2827 = vmatpush.bf16.xpose.msk.msrb.mxu3 %vm2826_vm10, %v3725_v54  ;;  %vm386_vm10 = vcmp.eq.s32.totalorder %v3909_v50, %v378_v8  ;;  %vm2810_vm9 = vmpackc.low %vm385_vm3, %vm381_vm0  ;;  %vm656_vm0 = vcmp.eq.s32.totalorder %v3863_v20, %v644_v19  ;;  %vm660_vm3 = vcmp.eq.s32.totalorder %v3867_v22, %v644_v19  ;;  %vm648_vm8 = vcmp.eq.s32.totalorder %v3840_v2, %v644_v19 }
  0x4d   : > { %vm2816_vm2 = vmpackc.low %vm386_vm10, %vm382_vm5  ;;  %vm653_vm5 = vcmp.eq.s32.totalorder %v3863_v20, %v641_v23  ;;  %vm657_vm10 = vcmp.eq.s32.totalorder %v3867_v22, %v641_v23  ;;  %v908_v48 = vperm.slane %v3878_v39, 4  ;;  %v754_v49 = vperm.slane %v3933_v55, 3 }
  0x4e   : > { %vm2870_vm1 = vmpackc.low %vm660_vm3, %vm656_vm0  ;;  %vm652_vm0 = vcmp.eq.s32.totalorder %v3909_v50, %v644_v19  ;;  %v755_v51 = vperm.slane %v3938_v56, 3  ;;  %v756_v57 = vperm.slane %v3955_v61, 3  ;;  %v757_v58 = vperm.slane %v4003_v9, 3 }
  0x4f   : > { %v1042_v59 = vperm.slane %v3880_v40, 5  ;;  %v1043_v60 = vperm.slane %v3888_v42, 5  ;;  %v1040_v0 = vperm.slane %v3876_v38, 5  ;;  %v5701_v1 = vmov 0 }
  0x50   : > { %v1041_v3 = vperm.slane %v3878_v39, 5  ;;  %v887_v4 = vperm.slane %v3933_v55, 4  ;;  %v888_v8 = vperm.slane %v3938_v56, 4  ;;  %v889_v11 = vperm.slane %v3955_v61, 4 }
  0x51   : > { %2811 = vmatpush.bf16.xpose.msk.msrb.mxu0 %vm2810_vm9, %v3725_v54  ;;  %vm654_vm9 = vcmp.eq.s32.totalorder %v3863_v20, %v642_v25  ;;  %v4339_v12 = vmul.f32 255.0, %v1421_v5  ;;  %v4348_v18 = vmul.f32 255.0, %v1423_v7  ;;  %v1175_v19 = vperm.slane %v3880_v40, 6 }
  0x52   : > { %2817 = vmatpush.bf16.xpose.msk.msrb.mxu1 %vm2816_vm2, %v3725_v54  ;;  %vm2858_vm12 = vmpackc.low %vm658_vm13, %vm654_vm9  ;;  %vm647_vm2 = vcmp.eq.s32.totalorder %v3840_v2, %v643_v17  ;;  %v4367_v26 = vmul.f32 255.0, %v1424_v13  ;;  %v1023_v52 = vperm.slane %v4003_v9, 5  ;;  %v4476_v63 = vperm.slane %v3876_v38, 7 }
  0x53   : > { %2823 = vmatpush.bf16.xpose.msk.msrb.mxu2 %vm2822_vm11, %v3725_v54  ;;  %vm2852_vm11 = vmpackc.low %vm657_vm10, %vm653_vm5  ;;  %vm646_vm10 = vcmp.eq.s32.totalorder %v3840_v2, %v642_v25 }
  0x54   : > { %2829 = vmatpush.bf16.xpose.msk.msrb.mxu3 %vm2828_vm4, %v3725_v54  ;;  %vm2864_vm4 = vmpackc.low %vm659_vm15, %vm655_vm6  ;;  %vm651_vm6 = vcmp.eq.s32.totalorder %v3909_v50, %v643_v17  ;;  %v890_v17 = vperm.slane %v4003_v9, 4 }
  0x55   : > { %vm2830_vm15 = vmpackc.low %vm4082_vm7, %vm4082_vm7  ;;  %vm792_vm7 = vcmp.eq.s32.totalorder %v3867_v22, %v776_v30 }
  0x56   : > { %vm5677_vm13 = vmpackc.low %vm4042_vm14, %vm4042_vm14  ;;  %vm650_vm14 = vcmp.eq.s32.totalorder %v3909_v50, %v642_v25  ;;  %v1173_v25 = vperm.slane %v3876_v38, 6  ;;  %v5735_v38 = vmov 0 }
  0x57   : > { %vm2866_vm5 = vmpackc.low %vm651_vm6, %vm647_vm2 }
  0x58   : > { %2813 = vmatmul.msk.bf16.vlgmr.msrb.gmra.mxu0 %vm5677_vm13, %v3725_v54  ;;  %vm2872_vm2 = vmpackc.low %vm652_vm0, %vm648_vm8  ;;  %vm4133_vm13 = vcmp.eq.s32.totalorder %v3840_v2, %v621_v28  ;;  %vm788_vm8 = vcmp.eq.s32.totalorder %v3863_v20, %v776_v30  ;;  %vm793_vm0 = vcmp.eq.s32.totalorder %v3867_v22, %v777_v31  ;;  %v1176_v28 = vperm.slane %v3888_v42, 6 }
  0x59   : > { %2853 = vmatpush.bf16.xpose.msk.msra.mxu0 %vm2852_vm11, %v3725_v54  ;;  %vm649_vm11 = vcmp.eq.s32.totalorder %v3909_v50, %v641_v23 }
  0x5a   : > { %2859 = vmatpush.bf16.xpose.msk.msra.mxu1 %vm2858_vm12, %v3725_v54  ;;  %vm645_vm12 = vcmp.eq.s32.totalorder %v3840_v2, %v641_v23  ;;  %v5709_v23 = vmov 0 }
  0x5b   : > { %2865 = vmatpush.bf16.xpose.msk.msra.mxu2 %vm2864_vm4, %v3725_v54  ;;  %vm5680_vm4 = vnez %v5672_v21  ;;  %2831 = vmatmul.msk.bf16.vlgmr.msrb.gmra.mxu3 %vm2830_vm15, %v3725_v54  ;;  %vm2854_vm6 = vmpackc.low %vm649_vm11, %vm645_vm12  ;;  %vm789_vm15 = vcmp.eq.s32.totalorder %v3863_v20, %v777_v31  ;;  %vm786_vm11 = vcmp.eq.s32.totalorder %v3863_v20, %v774_v32  ;;  %vm4170_vm12 = vcmp.eq.s32.totalorder %v3840_v2, %v624_v37 }
  0x5c   : > { %2871 = vmatpush.bf16.xpose.msk.msra.mxu3 %vm2870_vm1, %v3725_v54  ;;  %vm5678_vm1 = vnez %v5674_v24  ;;  %vm5681_vm9 = vmpackc.low %vm5680_vm4, %vm5680_vm4  ;;  %vm787_vm4 = vcmp.eq.s32.totalorder %v3863_v20, %v775_v34  ;;  %v4353_v21 = vmul.f32 255.0, %v1422_v10 }
  0x5d   : > { %vm5679_vm3 = vmpackc.low %vm5678_vm1, %vm5678_vm1  ;;  %2819 = vmatmul.msk.bf16.vlgmr.msrb.gmra.mxu1 %vm5681_vm9, %v3725_v54  ;;  %vm791_vm9 = vcmp.eq.s32.totalorder %v3867_v22, %v775_v34 }
  0x5e   : > { %2825 = vmatmul.msk.bf16.vlgmr.msrb.gmra.mxu2 %vm5679_vm3, %v3725_v54  ;;  %vm2860_vm1 = vmpackc.low %vm650_vm14, %vm646_vm10  ;;  %vm4140_vm3 = vcmp.eq.s32.totalorder %v3840_v2, %v622_v29  ;;  %vm784_vm10 = vcmp.eq.s32.totalorder %v3909_v50, %v776_v30  ;;  %v1429_v29 = vmul.f32 1.0039216, %v4339_v12  ;;  %v1430_v33 = vmul.f32 1.0039216, %v4353_v21 }
  0x5f   : > { %vm2908_vm14 = vmpackc.low %vm792_vm7, %vm788_vm8  ;;  %vm780_vm7 = vcmp.eq.s32.totalorder %v3840_v2, %v776_v30 }
  0x60   : > { %vm2902_vm8 = vmpackc.low %vm791_vm9, %vm787_vm4  ;;  %vm782_vm4 = vcmp.eq.s32.totalorder %v3909_v50, %v774_v32  ;;  %v1433_v35 = vfloor.f32 %v1429_v29  ;;  %v1434_v37 = vfloor.f32 %v1430_v33 }
  0x61   : > { %2855 = vmatpush.bf16.xpose.msk.msra.mxu0 %vm2854_vm6, %v3725_v54  ;;  %vm2914_vm6 = vmpackc.low %vm793_vm0, %vm789_vm15  ;;  %vm781_vm15 = vcmp.eq.s32.totalorder %v3840_v2, %v777_v31  ;;  %vm785_vm0 = vcmp.eq.s32.totalorder %v3909_v50, %v777_v31  ;;  %v1174_v31 = vperm.slane %v3878_v39, 6 }
  0x62   : > { %2861 = vmatpush.bf16.xpose.msk.msra.mxu1 %vm2860_vm1, %v3725_v54  ;;  %vm2910_vm9 = vmpackc.low %vm784_vm10, %vm780_vm7  ;;  %v3467_v47 = vcvt.f32.s32 %v1434_v37  ;;  %v1286_v37 = vperm.slane %v3933_v55, 7 }
  0x63   : > { %2867 = vmatpush.bf16.xpose.msk.msra.mxu2 %vm2866_vm5, %v3725_v54  ;;  %vm790_vm5 = vcmp.eq.s32.totalorder %v3867_v22, %v774_v32  ;;  %vm5692_vm10 = vmpackc.low %vm4133_vm13, %vm4133_vm13  ;;  %vm922_vm13 = vcmp.eq.s32.totalorder %v3863_v20, %v910_v45 }
  0x64   : > { %2873 = vmatpush.bf16.xpose.msk.msra.mxu3 %vm2872_vm2, %v3725_v54  ;;  %vm4164_vm2 = vcmp.eq.s32.totalorder %v3840_v2, %v623_v36  ;;  %vm2896_vm1 = vmpackc.low %vm790_vm5, %vm786_vm11  ;;  %vm778_vm5 = vcmp.eq.s32.totalorder %v3840_v2, %v774_v32  ;;  %v1431_v32 = vmul.f32 1.0039216, %v4348_v18 }
  0x65   : > { %vm2874_vm11 = vmpackc.low %vm4170_vm12, %vm4170_vm12 }
  0x66   : > { %vm5693_vm7 = vmpackc.low %vm4164_vm2, %vm4164_vm2  ;;  %v1435_v36 = vfloor.f32 %v1431_v32 }
  0x67   : > { %vm5694_vm2 = vmpackc.low %vm4140_vm3, %vm4140_vm3  ;;  %vm920_vm3 = vcmp.eq.s32.totalorder %v3863_v20, %v908_v48 }
  0x68   : > { %2857 = vmatmul.msk.bf16.vlgmr.msra.gmra.mxu0 %vm5692_vm10, %v3725_v54  ;;  %vm4240_vm10 = vcmp.eq.s32.totalorder %v3840_v2, %v754_v49 }
  0x69   : > { %2897 = vmatpush.bf16.xpose.msk.msrb.mxu0 %vm2896_vm1, %v3725_v54  ;;  %vm783_vm1 = vcmp.eq.s32.totalorder %v3909_v50, %v775_v34 }
  0x6a   : > { %2903 = vmatpush.bf16.xpose.msk.msrb.mxu1 %vm2902_vm8, %v3725_v54  ;;  %vm2916_vm8 = vmpackc.low %vm785_vm0, %vm781_vm15  ;;  %vm921_vm0 = vcmp.eq.s32.totalorder %v3863_v20, %v909_v44 }
  0x6b   : > { %2909 = vmatpush.bf16.xpose.msk.msrb.mxu2 %vm2908_vm14, %v3725_v54  ;;  %vm4194_vm14 = vmpackc.low %vm782_vm4, %vm778_vm5  ;;  %vm925_vm5 = vcmp.eq.s32.totalorder %v3867_v22, %v909_v44  ;;  %vm926_vm4 = vcmp.eq.s32.totalorder %v3867_v22, %v910_v45  ;;  %2875 = vmatmul.msk.bf16.vlgmr.msra.gmra.mxu3 %vm2874_vm11, %v3725_v54  ;;  %vm4246_vm11 = vcmp.eq.s32.totalorder %v3840_v2, %v755_v51  ;;  %v1022_v51 = vperm.slane %v3955_v61, 5 }
  0x6c   : > { %2915 = vmatpush.bf16.xpose.msk.msrb.mxu3 %vm2914_vm6, %v3725_v54  ;;  %vm779_vm6 = vcmp.eq.s32.totalorder %v3840_v2, %v775_v34  ;;  %vm2958_vm12 = vmpackc.low %vm926_vm4, %vm922_vm13  ;;  %vm914_vm13 = vcmp.eq.s32.totalorder %v3840_v2, %v910_v45  ;;  %vm918_vm4 = vcmp.eq.s32.totalorder %v3909_v50, %v910_v45  ;;  %v1432_v34 = vmul.f32 1.0039216, %v4367_v26 }
  0x6d   : > { %vm2904_vm15 = vmpackc.low %vm783_vm1, %vm779_vm6  ;;  %2863 = vmatmul.msk.bf16.vlgmr.msra.gmra.mxu1 %vm5694_vm2, %v3725_v54  ;;  %vm923_vm6 = vcmp.eq.s32.totalorder %v3867_v22, %v907_v46  ;;  %vm1054_vm2 = vcmp.eq.s32.totalorder %v3863_v20, %v1042_v59  ;;  %v3469_v45 = vcvt.f32.s32 %v1435_v36 }
  0x6e   : > { %2869 = vmatmul.msk.bf16.vlgmr.msra.gmra.mxu2 %vm5693_vm7, %v3725_v54  ;;  %vm2952_vm1 = vmpackc.low %vm925_vm5, %vm921_vm0  ;;  %vm917_vm0 = vcmp.eq.s32.totalorder %v3909_v50, %v909_v44  ;;  %vm1058_vm5 = vcmp.eq.s32.totalorder %v3867_v22, %v1042_v59  ;;  %v1436_v43 = vfloor.f32 %v1432_v34 }
  0x70   : > { %v3471_v49 = vcvt.f32.s32 %v1436_v43  ;;  %v1288_v43 = vperm.slane %v3955_v61, 7 }
  0x71   : > { %2899 = vmatpush.bf16.xpose.msk.msrb.mxu0 %vm4194_vm14, %v3725_v54 }
  0x72   : > { %2905 = vmatpush.bf16.xpose.msk.msrb.mxu1 %vm2904_vm15, %v3725_v54  ;;  %vm913_vm15 = vcmp.eq.s32.totalorder %v3840_v2, %v909_v44  ;;  %v3465_v44 = vcvt.f32.s32 %v1433_v35  ;;  %v5753_v35 = vmov 0 }
  0x73   : > { %2911 = vmatpush.bf16.xpose.msk.msrb.mxu2 %vm2910_vm9, %v3725_v54  ;;  %vm919_vm9 = vcmp.eq.s32.totalorder %v3863_v20, %v907_v46 }
  0x74   : > { %2917 = vmatpush.bf16.xpose.msk.msrb.mxu3 %vm2916_vm8, %v3725_v54  ;;  %vm924_vm8 = vcmp.eq.s32.totalorder %v3867_v22, %v908_v48  ;;  %vm2940_vm14 = vmpackc.low %vm923_vm6, %vm919_vm9  ;;  %vm911_vm9 = vcmp.eq.s32.totalorder %v3840_v2, %v907_v46  ;;  %vm915_vm6 = vcmp.eq.s32.totalorder %v3909_v50, %v907_v46  ;;  %v1020_v46 = vperm.slane %v3933_v55, 5 }
  0x75   : > { %vm2946_vm7 = vmpackc.low %vm924_vm8, %vm920_vm3  ;;  %vm912_vm3 = vcmp.eq.s32.totalorder %v3840_v2, %v908_v48  ;;  %vm916_vm8 = vcmp.eq.s32.totalorder %v3909_v50, %v908_v48  ;;  %v1021_v48 = vperm.slane %v3938_v56, 5 }
  0x79   : > { %2941 = vmatpush.bf16.xpose.msk.msra.mxu0 %vm2940_vm14, %v3725_v54  ;;  %vm2960_vm14 = vmpackc.low %vm918_vm4, %vm914_vm13  ;;  %vm1055_vm4 = vcmp.eq.s32.totalorder %v3863_v20, %v1043_v60 }
  0x7a   : > { %2947 = vmatpush.bf16.xpose.msk.msra.mxu1 %vm2946_vm7, %v3725_v54  ;;  %vm4278_vm7 = vcmp.eq.s32.totalorder %v3840_v2, %v757_v58  ;;  %v4464_v58 = vperm.slane %v3880_v40, 7 }
  0x7b   : > { %2953 = vmatpush.bf16.xpose.msk.msra.mxu2 %vm2952_vm1, %v3725_v54  ;;  %vm2954_vm1 = vmpackc.low %vm917_vm0, %vm913_vm15  ;;  %v5702_v1 = vsel %vm4278_vm7, 4294967295, %v5701_v1 }
  0x7c   : > { %2959 = vmatpush.bf16.xpose.msk.msra.mxu3 %vm2958_vm12, %v3725_v54  ;;  %vm4272_vm12 = vcmp.eq.s32.totalorder %v3840_v2, %v756_v57  ;;  %vm2942_vm15 = vmpackc.low %vm915_vm6, %vm911_vm9  ;;  %vm1059_vm9 = vcmp.eq.s32.totalorder %v3867_v22, %v1043_v60  ;;  %v5725_v57 = vmov 0 }
  0x7d   : > { %vm2948_vm0 = vmpackc.low %vm916_vm8, %vm912_vm3  ;;  %vm1056_vm3 = vcmp.eq.s32.totalorder %v3867_v22, %v1040_v0 }
  0x7e   : > { %vm2912_vm13 = vmpackc.low %vm4272_vm12, %vm4272_vm12  ;;  %vm1053_vm12 = vcmp.eq.s32.totalorder %v3863_v20, %v1041_v3 }
  0x7f   : > { %vm2996_vm8 = vmpackc.low %vm1058_vm5, %vm1054_vm2  ;;  %2913 = vmatmul.msk.bf16.vlgmr.msrb.gmra.mxu2 %vm2912_vm13, %v3725_v54  ;;  %vm5705_vm2 = vnez %v5702_v1  ;;  %v4488_v1 = vperm.slane %v3888_v42, 7 }
  0x80   : > { %vm3002_vm6 = vmpackc.low %vm1059_vm9, %vm1055_vm4  ;;  %vm1050_vm4 = vcmp.eq.s32.totalorder %v3909_v50, %v1042_v59  ;;  %vm1047_vm9 = vcmp.eq.s32.totalorder %v3840_v2, %v1043_v60 }
  0x81   : > { %2943 = vmatpush.bf16.xpose.msk.msra.mxu0 %vm2942_vm15, %v3725_v54  ;;  %vm5703_vm15 = vmpackc.low %vm4240_vm10, %vm4240_vm10 }
  0x82   : > { %2949 = vmatpush.bf16.xpose.msk.msra.mxu1 %vm2948_vm0, %v3725_v54  ;;  %2901 = vmatmul.msk.bf16.vlgmr.msrb.gmra.mxu0 %vm5703_vm15, %v3725_v54  ;;  %vm5704_vm5 = vmpackc.low %vm4246_vm11, %vm4246_vm11  ;;  %vm4324_vm0 = vcmp.eq.s32.totalorder %v3840_v2, %v887_v4  ;;  %vm1046_vm11 = vcmp.eq.s32.totalorder %v3840_v2, %v1042_v59  ;;  %vm4356_vm15 = vcmp.eq.s32.totalorder %v3840_v2, %v888_v8  ;;  %v5727_v59 = vmov 0 }
  0x83   : > { %2955 = vmatpush.bf16.xpose.msk.msra.mxu2 %vm2954_vm1, %v3725_v54  ;;  %vm1052_vm1 = vcmp.eq.s32.totalorder %v3863_v20, %v1040_v0  ;;  %2907 = vmatmul.msk.bf16.vlgmr.msrb.gmra.mxu1 %vm5704_vm5, %v3725_v54  ;;  %vm5706_vm10 = vmpackc.low %vm5705_vm2, %vm5705_vm2  ;;  %v5710_v23 = vsel %vm4356_vm15, 4294967295, %v5709_v23  ;;  %vm4370_vm2 = vcmp.eq.s32.totalorder %v3840_v2, %v889_v11  ;;  %v1307_v4 = vperm.slane %v3878_v39, 7 }
  0x84   : > { %2961 = vmatpush.bf16.xpose.msk.msra.mxu3 %vm2960_vm14, %v3725_v54  ;;  %vm1057_vm14 = vcmp.eq.s32.totalorder %v3867_v22, %v1041_v3  ;;  %vm2984_vm7 = vmpackc.low %vm1056_vm3, %vm1052_vm1  ;;  %vm1051_vm1 = vcmp.eq.s32.totalorder %v3909_v50, %v1043_v60  ;;  %vm1048_vm3 = vcmp.eq.s32.totalorder %v3909_v50, %v1040_v0 }
  0x85   : > { %2919 = vmatmul.msk.bf16.vlgmr.msrb.gmra.mxu3 %vm5706_vm10, %v3725_v54  ;;  %vm2990_vm13 = vmpackc.low %vm1057_vm14, %vm1053_vm12  ;;  %vm1045_vm12 = vcmp.eq.s32.totalorder %v3840_v2, %v1041_v3  ;;  %vm1049_vm14 = vcmp.eq.s32.totalorder %v3909_v50, %v1041_v3 }
  0x86   : > { %vm4362_vm5 = vmpackc.low %vm1051_vm1, %vm1047_vm9  ;;  %vm1187_vm9 = vcmp.eq.s32.totalorder %v3863_v20, %v1175_v19  ;;  %vm1191_vm1 = vcmp.eq.s32.totalorder %v3867_v22, %v1175_v19 }
  0x89   : > { %2985 = vmatpush.bf16.xpose.msk.msrb.mxu0 %vm2984_vm7, %v3725_v54 }
  0x8a   : > { %2991 = vmatpush.bf16.xpose.msk.msrb.mxu1 %vm2990_vm13, %v3725_v54  ;;  %vm4377_vm13 = vcmp.eq.s32.totalorder %v3840_v2, %v890_v17  ;;  %v1153_v17 = vperm.slane %v3933_v55, 6  ;;  %v1287_v55 = vperm.slane %v3938_v56, 7 }
  0x8b   : > { %2997 = vmatpush.bf16.xpose.msk.msrb.mxu2 %vm2996_vm8, %v3725_v54  ;;  %vm2998_vm8 = vmpackc.low %vm1050_vm4, %vm1046_vm11  ;;  %vm1192_vm4 = vcmp.eq.s32.totalorder %v3867_v22, %v1176_v28 }
  0x8c   : > { %3003 = vmatpush.bf16.xpose.msk.msrb.mxu3 %vm3002_vm6, %v3725_v54  ;;  %vm1044_vm6 = vcmp.eq.s32.totalorder %v3840_v2, %v1040_v0  ;;  %vm2992_vm11 = vmpackc.low %vm1049_vm14, %vm1045_vm12  ;;  %vm1188_vm14 = vcmp.eq.s32.totalorder %v3863_v20, %v1176_v28  ;;  %v5731_v0 = vmov 0 }
  0x8d   : > { %vm2986_vm10 = vmpackc.low %vm1048_vm3, %vm1044_vm6  ;;  %vm1185_vm3 = vcmp.eq.s32.totalorder %v3863_v20, %v1173_v25  ;;  %vm1190_vm6 = vcmp.eq.s32.totalorder %v3867_v22, %v1174_v31 }
  0x8e   : > { %vm2962_vm12 = vmpackc.low %vm4377_vm13, %vm4377_vm13  ;;  %vm1181_vm13 = vcmp.eq.s32.totalorder %v3909_v50, %v1173_v25 }
  0x8f   : > { %vm4408_vm15 = vmpackc.low %vm1192_vm4, %vm1188_vm14  ;;  %vm5721_vm4 = vnez %v5710_v23  ;;  %vm1182_vm14 = vcmp.eq.s32.totalorder %v3909_v50, %v1174_v31  ;;  %v1154_v23 = vperm.slane %v3938_v56, 6  ;;  %v5775_v56 = vmov 0 }
  0x91   : > { %2987 = vmatpush.bf16.xpose.msk.msrb.mxu0 %vm2986_vm10, %v3725_v54  ;;  %vm1186_vm10 = vcmp.eq.s32.totalorder %v3863_v20, %v1174_v31 }
  0x92   : > { %2993 = vmatpush.bf16.xpose.msk.msrb.mxu1 %vm2992_vm11, %v3725_v54  ;;  %vm5719_vm11 = vmpackc.low %vm4324_vm0, %vm4324_vm0 }
  0x93   : > { %2999 = vmatpush.bf16.xpose.msk.msrb.mxu2 %vm2998_vm8, %v3725_v54  ;;  %vm1189_vm8 = vcmp.eq.s32.totalorder %v3867_v22, %v1173_v25  ;;  %2945 = vmatmul.msk.bf16.vlgmr.msra.gmra.mxu0 %vm5719_vm11, %v3725_v54  ;;  %vm5722_vm0 = vmpackc.low %vm5721_vm4, %vm5721_vm4 }
  0x94   : > { %3005 = vmatpush.bf16.xpose.msk.msrb.mxu3 %vm4362_vm5, %v3725_v54  ;;  %vm3040_vm5 = vmpackc.low %vm1191_vm1, %vm1187_vm9  ;;  %2951 = vmatmul.msk.bf16.vlgmr.msra.gmra.mxu1 %vm5722_vm0, %v3725_v54  ;;  %vm1443_vm0 = vcmp.gt.s32.totalorder %v3467_v47, 0 }
  0x95   : > { %vm3028_vm7 = vmpackc.low %vm1189_vm8, %vm1185_vm3  ;;  %2963 = vmatmul.msk.bf16.vlgmr.msra.gmra.mxu3 %vm2962_vm12, %v3725_v54  ;;  %vm1180_vm3 = vcmp.eq.s32.totalorder %v3840_v2, %v1176_v28  ;;  %vm1184_vm8 = vcmp.eq.s32.totalorder %v3909_v50, %v1176_v28  ;;  %v1444_v5 = vsel %vm1443_vm0, %v3467_v47, 0  ;;  %v1156_v28 = vperm.slane %v4003_v9, 6 }
  0x96   : > { %vm5720_vm9 = vmpackc.low %vm4370_vm2, %vm4370_vm2  ;;  %vm1179_vm2 = vcmp.eq.s32.totalorder %v3840_v2, %v1175_v19  ;;  %v5782_v47 = vmov 0 }
  0x97   : > { %2957 = vmatmul.msk.bf16.vlgmr.msra.gmra.mxu2 %vm5720_vm9, %v3725_v54  ;;  %vm3034_vm1 = vmpackc.low %vm1190_vm6, %vm1186_vm10  ;;  %vm1177_vm6 = vcmp.eq.s32.totalorder %v3840_v2, %v1173_v25  ;;  %vm4459_vm10 = vcmp.eq.s32.totalorder %v3840_v2, %v1020_v46  ;;  %vm1441_vm9 = vcmp.gt.s32.totalorder %v3465_v44, 0  ;;  %v1155_v25 = vperm.slane %v3955_v61, 6 }
  0x98   : > { %v5726_v57 = vsel %vm4459_vm10, 4294967295, %v5725_v57  ;;  %vm3030_vm11 = vmpackc.low %vm1181_vm13, %vm1177_vm6  ;;  %v1442_v42 = vsel %vm1441_vm9, %v3465_v44, 0  ;;  %vm1323_vm13 = vcmp.eq.s32.totalorder %v3867_v22, %v1307_v4  ;;  %v1289_v61 = vperm.slane %v4003_v9, 7 }
  0x99   : > { %3029 = vmatpush.bf16.xpose.msk.msra.mxu0 %vm3028_vm7, %v3725_v54  ;;  %vm1183_vm7 = vcmp.eq.s32.totalorder %v3909_v50, %v1175_v19  ;;  %vm4471_vm4 = vmpackc.low %vm1184_vm8, %vm1180_vm3  ;;  %vm4494_vm3 = vcmp.eq.s32.totalorder %v3840_v2, %v1023_v52  ;;  %vm1449_vm8 = vcmp.lt.s32.totalorder %v1442_v42, 255  ;;  %v5764_v46 = vmov 0 }
  0x9a   : > { %3035 = vmatpush.bf16.xpose.msk.msra.mxu1 %vm3034_vm1, %v3725_v54  ;;  %vm4452_vm12 = vmpackc.low %vm1183_vm7, %vm1179_vm2  ;;  %vm4467_vm1 = vcmp.eq.s32.totalorder %v3840_v2, %v1021_v48  ;;  %vm1447_vm2 = vcmp.gt.s32.totalorder %v3471_v49, 0  ;;  %vm4479_vm7 = vcmp.eq.s32.totalorder %v3840_v2, %v1022_v51  ;;  %v5736_v38 = vsel %vm4494_vm3, 4294967295, %v5735_v38 }
  0x9b   : > { %3041 = vmatpush.bf16.xpose.msk.msra.mxu2 %vm3040_vm5, %v3725_v54  ;;  %vm1445_vm5 = vcmp.gt.s32.totalorder %v3469_v45, 0  ;;  %v5728_v59 = vsel %vm4467_vm1, 4294967295, %v5727_v59  ;;  %v5732_v0 = vsel %vm4479_vm7, 4294967295, %v5731_v0  ;;  %v1448_v6 = vsel %vm1447_vm2, %v3471_v49, 0 }
  0x9c   : > { %3047 = vmatpush.bf16.xpose.msk.msra.mxu3 %vm4408_vm15, %v3725_v54  ;;  %vm1178_vm15 = vcmp.eq.s32.totalorder %v3840_v2, %v1174_v31  ;;  %v1446_v3 = vsel %vm1445_vm5, %v3469_v45, 0  ;;  %vm1318_vm5 = vcmp.eq.s32.totalorder %v3863_v20, %v4476_v63  ;;  %vm1321_vm2 = vcmp.eq.s32.totalorder %v3863_v20, %v4488_v1 }
  0x9d   : > { %vm4483_vm6 = vmpackc.low %vm1182_vm14, %vm1178_vm15  ;;  %vm1320_vm15 = vcmp.eq.s32.totalorder %v3863_v20, %v4464_v58  ;;  %vm1324_vm14 = vcmp.eq.s32.totalorder %v3867_v22, %v4464_v58  ;;  %vm1453_vm9 = vcmp.lt.s32.totalorder %v1446_v3, 255  ;;  %vm1451_vm1 = vcmp.lt.s32.totalorder %v1444_v5, 255 }
  0x9e   : > { %vm1455_vm7 = vcmp.lt.s32.totalorder %v1448_v6, 255  ;;  %v4532_v39 = vsel %vm1453_vm9, %v1446_v3, 255  ;;  %v4538_v8 = vsel %vm1449_vm8, %v1442_v42, 255  ;;  %vm5739_vm3 = vnez %v5726_v57 }
  0x9f   : > { %v4552_v10 = vsel %vm1451_vm1, %v1444_v5, 255  ;;  %v4554_v11 = vsel %vm1455_vm7, %v1448_v6, 255  ;;  %v4559_v13 = vand.u32 31, %v4532_v39  ;;  %vm5745_vm1 = vnez %v5736_v38 }
  0xa0   : > { %vm5746_vm7 = vmpackc.low %vm5745_vm1, %vm5745_vm1  ;;  %v4579_v19 = vand.u32 31, %v4538_v8  ;;  %vm1314_vm9 = vcmp.eq.s32.totalorder %v3909_v50, %v4476_v63  ;;  %v4591_v24 = vand.u32 31, %v4554_v11  ;;  %v4599_v27 = vand.u32 31, %v4552_v10 }
  0xa1   : > { %3031 = vmatpush.bf16.xpose.msk.msra.mxu0 %vm3030_vm11, %v3725_v54  ;;  %vm1322_vm11 = vcmp.eq.s32.totalorder %v3867_v22, %v4476_v63  ;;  %v1587_v30 = vperm.slane %v4559_v13, 1  ;;  %v5762_v45 = vmov 0  ;;  %v5780_v9 = vmov 0 }
  0xa2   : > { %3037 = vmatpush.bf16.xpose.msk.msra.mxu1 %vm4483_vm6, %v3725_v54  ;;  %vm1319_vm6 = vcmp.eq.s32.totalorder %v3863_v20, %v1307_v4  ;;  %vm3072_vm10 = vmpackc.low %vm1322_vm11, %vm1318_vm5  ;;  %v1585_v32 = vperm.slane %v4579_v19, 1  ;;  %v4622_v34 = vperm.slane %v4591_v24, 1  ;;  %v1586_v36 = vperm.slane %v4599_v27, 1 }
  0xa3   : > { %3043 = vmatpush.bf16.xpose.msk.msra.mxu2 %vm4452_vm12, %v3725_v54  ;;  %vm3084_vm12 = vmpackc.low %vm1324_vm14, %vm1320_vm15  ;;  %vm5741_vm14 = vnez %v5732_v0  ;;  %v1505_v48 = vperm.slane %v4579_v19, 0  ;;  %v1473_v51 = vshra.s32 %v4538_v8, 5  ;;  %v1474_v52 = vshra.s32 %v4552_v10, 5 }
  0xa4   : > { %3049 = vmatpush.bf16.xpose.msk.msra.mxu3 %vm4471_vm4, %v3725_v54  ;;  %vm1325_vm4 = vcmp.eq.s32.totalorder %v3867_v22, %v4488_v1  ;;  %vm5740_vm15 = vmpackc.low %vm5739_vm3, %vm5739_vm3  ;;  %vm5743_vm3 = vnez %v5728_v59  ;;  %v1475_v57 = vshra.s32 %v4532_v39, 5  ;;  %v1771_v42 = vperm.slane %v4559_v13, 2 }
  0xa5   : > { %vm4534_vm0 = vmpackc.low %vm1325_vm4, %vm1321_vm2  ;;  %2989 = vmatmul.msk.bf16.vlgmr.msrb.gmra.mxu0 %vm5740_vm15, %v3725_v54  ;;  %3007 = vmatmul.msk.bf16.vlgmr.msrb.gmra.mxu3 %vm5746_vm7, %v3725_v54  ;;  %vm1313_vm2 = vcmp.eq.s32.totalorder %v3840_v2, %v4488_v1  ;;  %vm1317_vm4 = vcmp.eq.s32.totalorder %v3909_v50, %v4488_v1  ;;  %vm1315_vm15 = vcmp.eq.s32.totalorder %v3909_v50, %v1307_v4  ;;  %vm1458_vm7 = vcmp.ge.f32.partialorder %v4353_v21, 0.0 }
  0xa6   : > { %vm5742_vm5 = vmpackc.low %vm5741_vm14, %vm5741_vm14  ;;  %vm4605_vm14 = vcmp.eq.s32.totalorder %v3840_v2, %v1153_v17  ;;  %v5808_v5 = vmov 0  ;;  %v1769_v39 = vperm.slane %v4579_v19, 2  ;;  %v1772_v8 = vperm.slane %v4591_v24, 2 }
  0xa7   : > { %3001 = vmatmul.msk.bf16.vlgmr.msrb.gmra.mxu2 %vm5742_vm5, %v3725_v54  ;;  %vm3078_vm11 = vmpackc.low %vm1323_vm13, %vm1319_vm6  ;;  %vm1316_vm13 = vcmp.eq.s32.totalorder %v3909_v50, %v4464_v58  ;;  %vm1311_vm6 = vcmp.eq.s32.totalorder %v3840_v2, %v1307_v4  ;;  %v2038_v6 = vperm.slane %v4591_v24, 4  ;;  %v2036_v7 = vperm.slane %v4599_v27, 4 }
  0xa8   : > { %vm5744_vm8 = vmpackc.low %vm5743_vm3, %vm5743_vm3  ;;  %v2170_v41 = vperm.slane %v4559_v13, 5 }
  0xa9   : > { %3073 = vmatpush.bf16.xpose.msk.msrb.mxu0 %vm3072_vm10, %v3725_v54  ;;  %2995 = vmatmul.msk.bf16.vlgmr.msrb.gmra.mxu1 %vm5744_vm8, %v3725_v54  ;;  %vm1312_vm10 = vcmp.eq.s32.totalorder %v3840_v2, %v4464_v58  ;;  %vm3092_vm3 = vmpackc.low %vm1317_vm4, %vm1313_vm2  ;;  %vm4617_vm8 = vcmp.eq.s32.totalorder %v3840_v2, %v1155_v25  ;;  %vm1597_vm4 = vcmp.eq.s32.totalorder %v3863_v20, %v1585_v32  ;;  %vm1457_vm2 = vcmp.ge.f32.partialorder %v4339_v12, 0.0 }
  0xaa   : > { %3079 = vmatpush.bf16.xpose.msk.msrb.mxu1 %vm3078_vm11, %v3725_v54  ;;  %vm4611_vm11 = vcmp.eq.s32.totalorder %v3840_v2, %v1154_v23  ;;  %vm3080_vm1 = vmpackc.low %vm1315_vm15, %vm1311_vm6  ;;  %vm1600_vm15 = vcmp.eq.s32.totalorder %v3863_v20, %v4622_v34  ;;  %v1476_v58 = vshra.s32 %v4554_v11, 5  ;;  %v1770_v11 = vperm.slane %v4599_v27, 2 }
  0xab   : > { %3085 = vmatpush.bf16.xpose.msk.msrb.mxu2 %vm3084_vm12, %v3725_v54  ;;  %vm1310_vm12 = vcmp.eq.s32.totalorder %v3840_v2, %v4476_v63 }
  0xac   : > { %3091 = vmatpush.bf16.xpose.msk.msrb.mxu3 %vm4534_vm0, %v3725_v54  ;;  %vm3086_vm0 = vmpackc.low %vm1316_vm13, %vm1312_vm10  ;;  %vm4628_vm10 = vcmp.eq.s32.totalorder %v3840_v2, %v1156_v28 }
  0xad   : > { %vm3074_vm5 = vmpackc.low %vm1314_vm9, %vm1310_vm12  ;;  %v5754_v35 = vsel %vm4628_vm10, 4294967295, %v5753_v35  ;;  %vm1599_vm12 = vcmp.eq.s32.totalorder %v3863_v20, %v1587_v30  ;;  %vm1603_vm9 = vcmp.eq.s32.totalorder %v3867_v22, %v1587_v30 }
  0xae   : > { %vm4655_vm13 = vmpackc.low %vm1603_vm9, %vm1599_vm12  ;;  %vm1459_vm12 = vcmp.ge.f32.partialorder %v4348_v18, 0.0 }
  0xaf   : > { %vm5759_vm9 = vmpackc.low %vm4605_vm14, %vm4605_vm14  ;;  %vm1460_vm14 = vcmp.ge.f32.partialorder %v4367_v26, 0.0 }
  0xb1   : > { %3075 = vmatpush.bf16.xpose.msk.msrb.mxu0 %vm3074_vm5, %v3725_v54  ;;  %vm1604_vm5 = vcmp.eq.s32.totalorder %v3867_v22, %v4622_v34 }
  0xb2   : > { %3081 = vmatpush.bf16.xpose.msk.msrb.mxu1 %vm3080_vm1, %v3725_v54  ;;  %vm1602_vm1 = vcmp.eq.s32.totalorder %v3867_v22, %v1586_v36  ;;  %vm4664_vm10 = vmpackc.low %vm1604_vm5, %vm1600_vm15  ;;  %vm5761_vm15 = vcmp.lt.s32.totalorder %v3853_v14, 1024  ;;  %v5767_v14 = vmov 0 }
  0xb3   : > { %3087 = vmatpush.bf16.xpose.msk.msrb.mxu2 %vm3086_vm0, %v3725_v54  ;;  %vm1601_vm0 = vcmp.eq.s32.totalorder %v3867_v22, %v1585_v32  ;;  %vm4685_vm5 = vmand %vm5761_vm15, %vm1457_vm2 }
  0xb4   : > { %3093 = vmatpush.bf16.xpose.msk.msrb.mxu3 %vm3092_vm3, %v3725_v54  ;;  %vm1598_vm3 = vcmp.eq.s32.totalorder %v3863_v20, %v1586_v36  ;;  %vm3136_vm6 = vmpackc.low %vm1601_vm0, %vm1597_vm4  ;;  %v5763_v45 = vsel %vm4685_vm5, 4294967295, %v5762_v45 }
  0xb5   : > { %3033 = vmatmul.msk.bf16.vlgmr.msra.gmra.mxu0 %vm5759_vm9, %v3725_v54  ;;  %vm5760_vm4 = vmpackc.low %vm4617_vm8, %vm4617_vm8  ;;  %vm4691_vm9 = vcmp.eq.s32.totalorder %v3840_v2, %v1286_v37  ;;  %vm5766_vm8 = vcmp.lt.s32.totalorder %v3856_v15, 1024  ;;  %v5772_v15 = vmov 0 }
  0xb6   : > { %vm3142_vm0 = vmpackc.low %vm1602_vm1, %vm1598_vm3  ;;  %v5765_v46 = vsel %vm4691_vm9, 4294967295, %v5764_v46  ;;  %vm5770_vm1 = vnez %v5754_v35 }
  0xb7   : > { %3045 = vmatmul.msk.bf16.vlgmr.msra.gmra.mxu2 %vm5760_vm4, %v3725_v54  ;;  %vm4701_vm3 = vmand %vm5766_vm8, %vm1458_vm7  ;;  %vm1591_vm7 = vcmp.eq.s32.totalorder %v3840_v2, %v1587_v30  ;;  %vm1595_vm4 = vcmp.eq.s32.totalorder %v3909_v50, %v1587_v30  ;;  %vm1589_vm8 = vcmp.eq.s32.totalorder %v3840_v2, %v1585_v32 }
  0xb8   : > { %v5768_v14 = vsel %vm4701_vm3, 4294967295, %v5767_v14  ;;  %vm5769_vm2 = vmpackc.low %vm4611_vm11, %vm4611_vm11  ;;  %vm5774_vm11 = vcmp.lt.s32.totalorder %v3859_v16, 1024  ;;  %v5778_v16 = vmov 0  ;;  %vm1594_vm3 = vcmp.eq.s32.totalorder %v3909_v50, %v1586_v36 }
  0xb9   : > { %3137 = vmatpush.bf16.xpose.msk.msra.mxu0 %vm3136_vm6, %v3725_v54  ;;  %3039 = vmatmul.msk.bf16.vlgmr.msra.gmra.mxu1 %vm5769_vm2, %v3725_v54  ;;  %vm4718_vm6 = vcmp.eq.s32.totalorder %v3840_v2, %v1288_v43  ;;  %vm4728_vm15 = vmand %vm5774_vm11, %vm1459_vm12  ;;  %vm1593_vm2 = vcmp.eq.s32.totalorder %v3909_v50, %v1585_v32  ;;  %vm4747_vm12 = vcmp.eq.s32.totalorder %v3840_v2, %v1287_v55  ;;  %v1904_v43 = vperm.slane %v4559_v13, 3 }
  0xba   : > { %v5773_v15 = vsel %vm4718_vm6, 4294967295, %v5772_v15  ;;  %v5776_v56 = vsel %vm4728_vm15, 4294967295, %v5775_v56  ;;  %3143 = vmatpush.bf16.xpose.msk.msra.mxu1 %vm3142_vm0, %v3725_v54  ;;  %v5781_v9 = vsel %vm4747_vm12, 4294967295, %v5780_v9  ;;  %vm1592_vm0 = vcmp.eq.s32.totalorder %v3840_v2, %v4622_v34  ;;  %vm3138_vm5 = vmpackc.low %vm1593_vm2, %vm1589_vm8 }
  0xbb   : > { %3149 = vmatpush.bf16.xpose.msk.msra.mxu2 %vm4655_vm13, %v3725_v54  ;;  %vm5771_vm13 = vmpackc.low %vm5770_vm1, %vm5770_vm1  ;;  %vm5777_vm1 = vcmp.lt.s32.totalorder %v3958_v62, 1024  ;;  %vm1596_vm11 = vcmp.eq.s32.totalorder %v3909_v50, %v4622_v34  ;;  %vm1590_vm15 = vcmp.eq.s32.totalorder %v3840_v2, %v1586_v36  ;;  %v1507_v62 = vperm.slane %v4559_v13, 0 }
  0xbc   : > { %3051 = vmatmul.msk.bf16.vlgmr.msra.gmra.mxu3 %vm5771_vm13, %v3725_v54  ;;  %vm4742_vm13 = vmand %vm5777_vm1, %vm1460_vm14  ;;  %vm1467_vm8 = vcmp.le.f32.partialorder %v4348_v18, 255.0  ;;  %vm5785_vm2 = vnez %v5763_v45 }
  0xbd   : > { %3155 = vmatpush.bf16.xpose.msk.msra.mxu3 %vm4664_vm10, %v3725_v54  ;;  %v5779_v16 = vsel %vm4742_vm13, 4294967295, %v5778_v16  ;;  %vm4752_vm10 = vcmp.eq.s32.totalorder %v3840_v2, %v1289_v61  ;;  %vm3150_vm13 = vmpackc.low %vm1595_vm4, %vm1591_vm7  ;;  %vm1466_vm7 = vcmp.le.f32.partialorder %v4353_v21, 255.0  ;;  %v1506_v21 = vperm.slane %v4599_v27, 0 }
  0xbe   : > { %v5783_v47 = vsel %vm4752_vm10, 4294967295, %v5782_v47  ;;  %vm1465_vm10 = vcmp.le.f32.partialorder %v4339_v12, 255.0  ;;  %vm3156_vm6 = vmpackc.low %vm1596_vm11, %vm1592_vm0  ;;  %v1508_v12 = vperm.slane %v4591_v24, 0  ;;  %vm1468_vm0 = vcmp.le.f32.partialorder %v4367_v26, 255.0 }
  0xbf   : > { %vm3144_vm4 = vmpackc.low %vm1594_vm3, %vm1590_vm15  ;;  %vm5788_vm3 = vnez %v5768_v14  ;;  %vm1522_vm14 = vcmp.eq.s32.totalorder %v3867_v22, %v1506_v21  ;;  %v1902_v61 = vperm.slane %v4579_v19, 3  ;;  %v2171_v14 = vperm.slane %v4591_v24, 5 }
  0xc0   : > { %vm4784_vm9 = vmand %vm5785_vm2, %vm1465_vm10  ;;  %vm5791_vm10 = vnez %v5776_v56  ;;  %vm1521_vm2 = vcmp.eq.s32.totalorder %v3867_v22, %v1505_v48 }
  0xc1   : > { %3139 = vmatpush.bf16.xpose.msk.msra.mxu0 %vm3138_vm5, %v3725_v54  ;;  %vm4792_vm15 = vmand %vm5788_vm3, %vm1466_vm7  ;;  %vm1523_vm5 = vcmp.eq.s32.totalorder %v3867_v22, %v1507_v62  ;;  %vm1517_vm7 = vcmp.eq.s32.totalorder %v3863_v20, %v1505_v48  ;;  %vm5794_vm3 = vnez %v5779_v16  ;;  %v4824_v59 = vsel %vm4784_vm9, %v1473_v51, 4294967295 }
  0xc2   : > { %3145 = vmatpush.bf16.xpose.msk.msra.mxu1 %vm3144_vm4, %v3725_v54  ;;  %vm4803_vm11 = vmand %vm5791_vm10, %vm1467_vm8  ;;  %vm1524_vm4 = vcmp.eq.s32.totalorder %v3867_v22, %v1508_v12  ;;  %vm1518_vm10 = vcmp.eq.s32.totalorder %v3863_v20, %v1506_v21  ;;  %v4840_v60 = vsel %vm4792_vm15, %v1474_v52, 4294967295  ;;  %vm5803_vm15 = vnez %v5783_v47 }
  0xc3   : > { %3151 = vmatpush.bf16.xpose.msk.msra.mxu2 %vm3150_vm13, %v3725_v54  ;;  %vm1519_vm13 = vcmp.eq.s32.totalorder %v3863_v20, %v1507_v62  ;;  %vm4812_vm1 = vmand %vm5794_vm3, %vm1468_vm0  ;;  %vm5797_vm3 = vnez %v5765_v46  ;;  %v4844_v63 = vsel %vm4803_vm11, %v1475_v57, 4294967295  ;;  %v1565_v0 = vperm.slane %v4824_v59, 1 }
  0xc4   : > { %v5796_v53 = vsel %vm4812_vm1, 4294967295, %v5795_v53  ;;  %vm3172_vm8 = vmpackc.low %vm1523_vm5, %vm1519_vm13  ;;  %vm5799_vm13 = vnez %v5773_v15  ;;  %v1566_v1 = vperm.slane %v4840_v60, 1  ;;  %v1567_v3 = vperm.slane %v4844_v63, 1 }
  0xc5   : > { %3157 = vmatpush.bf16.xpose.msk.msra.mxu3 %vm3156_vm6, %v3725_v54  ;;  %vm1520_vm6 = vcmp.eq.s32.totalorder %v3863_v20, %v1508_v12  ;;  %vm3160_vm12 = vmpackc.low %vm1521_vm2, %vm1517_vm7  ;;  %vm5805_vm11 = vnez %v5796_v53  ;;  %vm1515_vm2 = vcmp.eq.s32.totalorder %v3909_v50, %v1507_v62  ;;  %v526_v17 = vpop.f32.mrf.mxu0  ;;  %v1485_v28 = vperm.slane %v4824_v59, 0 }
  0xc6   : > { %vm3178_vm0 = vmpackc.low %vm1524_vm4, %vm1520_vm6  ;;  %v4863_v40 = vsel %vm5805_vm11, %v1476_v58, 4294967295  ;;  %vm1509_vm6 = vcmp.eq.s32.totalorder %v3840_v2, %v1505_v48  ;;  %vm1513_vm4 = vcmp.eq.s32.totalorder %v3909_v50, %v1505_v48  ;;  %v539_v23 = vpop.f32.mrf.mxu1  ;;  %v1486_v31 = vperm.slane %v4840_v60, 0 }
  0xc7   : > { %vm5798_vm1 = vmpackc.low %vm5797_vm3, %vm5797_vm3  ;;  %v1568_v38 = vperm.slane %v4863_v40, 1  ;;  %v540_v25 = vadd.f32 %v539_v23, %v526_v17  ;;  %v1487_v34 = vperm.slane %v4844_v63, 0  ;;  %v1488_v36 = vperm.slane %v4863_v40, 0 }
  0xc8   : > { %3077 = vmatmul.msk.bf16.vlgmr.msrb.gmra.mxu0 %vm5798_vm1, %v3725_v54  ;;  %vm5800_vm5 = vmpackc.low %vm5799_vm13, %vm5799_vm13  ;;  %vm5801_vm1 = vnez %v5781_v9  ;;  %vm1510_vm13 = vcmp.eq.s32.totalorder %v3840_v2, %v1506_v21  ;;  %v1905_v46 = vperm.slane %v4591_v24, 3  ;;  %v1903_v15 = vperm.slane %v4599_v27, 3 }
  0xc9   : > { %3089 = vmatmul.msk.bf16.vlgmr.msrb.gmra.mxu2 %vm5800_vm5, %v3725_v54  ;;  %vm3166_vm9 = vmpackc.low %vm1522_vm14, %vm1518_vm10  ;;  %3161 = vmatpush.bf16.xpose.msk.msrb.mxu0 %vm3160_vm12, %v3725_v54  ;;  %vm1511_vm12 = vcmp.eq.s32.totalorder %v3840_v2, %v1507_v62  ;;  %vm1516_vm10 = vcmp.eq.s32.totalorder %v3909_v50, %v1508_v12  ;;  %vm1514_vm5 = vcmp.eq.s32.totalorder %v3909_v50, %v1506_v21  ;;  %v1750_v21 = vperm.slane %v4840_v60, 2 }
  0xca   : > { %vm5802_vm7 = vmpackc.low %vm5801_vm1, %vm5801_vm1  ;;  %vm4885_vm1 = vcmp.eq.s32.totalorder %v3840_v2, %v1566_v1  ;;  %v1751_v51 = vperm.slane %v4844_v63, 2  ;;  %v1752_v53 = vperm.slane %v4863_v40, 2  ;;  %v2037_v1 = vperm.slane %v4559_v13, 4 }
  0xcb   : > { %3173 = vmatpush.bf16.xpose.msk.msrb.mxu2 %vm3172_vm8, %v3725_v54  ;;  %3083 = vmatmul.msk.bf16.vlgmr.msrb.gmra.mxu1 %vm5802_vm7, %v3725_v54  ;;  %vm5804_vm14 = vmpackc.low %vm5803_vm15, %vm5803_vm15  ;;  %vm1512_vm8 = vcmp.eq.s32.totalorder %v3840_v2, %v1508_v12  ;;  %v5809_v5 = vsel %vm4885_vm1, 4294967295, %v5808_v5  ;;  %vm4895_vm15 = vcmp.eq.s32.totalorder %v3840_v2, %v1567_v3  ;;  %v1749_v12 = vperm.slane %v4824_v59, 2 }
  0xcc   : > { %3095 = vmatmul.msk.bf16.vlgmr.msrb.gmra.mxu3 %vm5804_vm14, %v3725_v54  ;;  %3167 = vmatpush.bf16.xpose.msk.msrb.mxu1 %vm3166_vm9, %v3725_v54  ;;  %vm3174_vm3 = vmpackc.low %vm1515_vm2, %vm1511_vm12  ;;  %vm4904_vm12 = vcmp.eq.s32.totalorder %v3840_v2, %v1568_v38  ;;  %v2304_v38 = vperm.slane %v4591_v24, 6  ;;  %v2281_v44 = vperm.slane %v4824_v59, 6  ;;  %v2283_v55 = vperm.slane %v4844_v63, 6 }
  0xcd   : > { %3179 = vmatpush.bf16.xpose.msk.msrb.mxu3 %vm3178_vm0, %v3725_v54  ;;  %vm4879_vm0 = vcmp.eq.s32.totalorder %v3840_v2, %v1565_v0  ;;  %vm3162_vm9 = vmpackc.low %vm1513_vm4, %vm1509_vm6  ;;  %vm1783_vm6 = vcmp.eq.s32.totalorder %v3863_v20, %v1771_v42  ;;  %vm1787_vm4 = vcmp.eq.s32.totalorder %v3867_v22, %v1771_v42  ;;  %v552_v29 = vpop.f32.mrf.mxu2  ;;  %v528_v30 = vpop.f32.mrf.mxu0 }
  0xce   : > { %vm4889_vm7 = vmpackc.low %vm1516_vm10, %vm1512_vm8  ;;  %vm1781_vm10 = vcmp.eq.s32.totalorder %v3863_v20, %v1769_v39  ;;  %vm1782_vm8 = vcmp.eq.s32.totalorder %v3863_v20, %v1770_v11  ;;  %v553_v32 = vadd.f32 %v552_v29, %v540_v25  ;;  %v541_v33 = vpop.f32.mrf.mxu1  ;;  %v565_v35 = vpop.f32.mrf.mxu3  ;;  %v1882_v25 = vperm.slane %v4824_v59, 3 }
  0xcf   : > { %vm3168_vm14 = vmpackc.low %vm1514_vm5, %vm1510_vm13  ;;  %vm1784_vm5 = vcmp.eq.s32.totalorder %v3863_v20, %v1772_v8  ;;  %v1883_v29 = vperm.slane %v4840_v60, 3 }
  0xd0   : > { %vm3158_vm13 = vmpackc.low %vm4904_vm12, %vm4904_vm12  ;;  %v566_v37 = vadd.f32 %v565_v35, %v553_v32 }
  0xd1   : > { %3163 = vmatpush.bf16.xpose.msk.msrb.mxu0 %vm3162_vm9, %v3725_v54  ;;  %vm1788_vm9 = vcmp.eq.s32.totalorder %v3867_v22, %v1772_v8  ;;  %vm3216_vm2 = vmpackc.low %vm1787_vm4, %vm1783_vm6  ;;  %vm5818_vm4 = vnez %v5809_v5 }
  0xd2   : > { %vm3222_vm11 = vmpackc.low %vm1788_vm9, %vm1784_vm5  ;;  %vm1778_vm5 = vcmp.eq.s32.totalorder %v3909_v50, %v1770_v11  ;;  %vm4972_vm9 = vcmp.eq.s32.totalorder %v3840_v2, %v1485_v28 }
  0xd3   : > { %3175 = vmatpush.bf16.xpose.msk.msrb.mxu2 %vm3174_vm3, %v3725_v54  ;;  %vm1785_vm3 = vcmp.eq.s32.totalorder %v3867_v22, %v1769_v39  ;;  %vm5816_vm1 = vmpackc.low %vm4879_vm0, %vm4879_vm0  ;;  %vm1775_vm0 = vcmp.eq.s32.totalorder %v3840_v2, %v1771_v42 }
  0xd4   : > { %3169 = vmatpush.bf16.xpose.msk.msrb.mxu1 %vm3168_vm14, %v3725_v54  ;;  %vm3204_vm14 = vmpackc.low %vm1785_vm3, %vm1781_vm10  ;;  %vm1780_vm3 = vcmp.eq.s32.totalorder %v3909_v50, %v1772_v8 }
  0xd5   : > { %3181 = vmatpush.bf16.xpose.msk.msrb.mxu3 %vm4889_vm7, %v3725_v54  ;;  %vm1786_vm7 = vcmp.eq.s32.totalorder %v3867_v22, %v1770_v11  ;;  %vm5817_vm12 = vmpackc.low %vm4895_vm15, %vm4895_vm15  ;;  %vm1773_vm15 = vcmp.eq.s32.totalorder %v3840_v2, %v1769_v39  ;;  %v554_v56 = vpop.f32.mrf.mxu2  ;;  %v578_v9 = vpop.f32.mrf.mxu0 }
  0xd6   : > { %vm3210_vm6 = vmpackc.low %vm1786_vm7, %vm1782_vm8  ;;  %vm1776_vm8 = vcmp.eq.s32.totalorder %v3840_v2, %v1772_v8  ;;  %v567_v16 = vpop.f32.mrf.mxu3  ;;  %v579_v47 = vadd.f32 %v578_v9, %v566_v37  ;;  %v2169_v56 = vperm.slane %v4599_v27, 5 }
  0xd7   : > { %vm5819_vm10 = vmpackc.low %vm5818_vm4, %vm5818_vm4 }
  0xd8   : > { %3141 = vmatmul.msk.bf16.vlgmr.msra.gmra.mxu0 %vm5816_vm1, %v3725_v54  ;;  %vm1779_vm1 = vcmp.eq.s32.totalorder %v3909_v50, %v1771_v42  ;;  %v2035_v42 = vperm.slane %v4579_v19, 4 }
  0xd9   : > { %3153 = vmatmul.msk.bf16.vlgmr.msra.gmra.mxu2 %vm5817_vm12, %v3725_v54  ;;  %3205 = vmatpush.bf16.xpose.msk.msra.mxu0 %vm3204_vm14, %v3725_v54  ;;  %vm4978_vm14 = vcmp.eq.s32.totalorder %v3840_v2, %v1486_v31  ;;  %vm4982_vm12 = vmpackc.low %vm1780_vm3, %vm1776_vm8  ;;  %vm1914_vm3 = vcmp.eq.s32.totalorder %v3863_v20, %v1902_v61  ;;  %vm1915_vm8 = vcmp.eq.s32.totalorder %v3863_v20, %v1903_v15  ;;  %v1884_v31 = vperm.slane %v4844_v63, 3 }
  0xda   : > { %v591_v62 = vpop.f32.mrf.mxu1 }
  0xdb   : > { %3217 = vmatpush.bf16.xpose.msk.msra.mxu2 %vm3216_vm2, %v3725_v54  ;;  %3147 = vmatmul.msk.bf16.vlgmr.msra.gmra.mxu1 %vm5819_vm10, %v3725_v54  ;;  %vm1777_vm2 = vcmp.eq.s32.totalorder %v3909_v50, %v1769_v39  ;;  %v592_v48 = vadd.f32 %v591_v62, %v579_v47 }
  0xdc   : > { %3159 = vmatmul.msk.bf16.vlgmr.msra.gmra.mxu3 %vm3158_vm13, %v3725_v54  ;;  %3211 = vmatpush.bf16.xpose.msk.msra.mxu1 %vm3210_vm6, %v3725_v54  ;;  %vm1774_vm13 = vcmp.eq.s32.totalorder %v3840_v2, %v1770_v11  ;;  %vm3206_vm7 = vmpackc.low %vm1777_vm2, %vm1773_vm15  ;;  %vm4988_vm6 = vcmp.eq.s32.totalorder %v3840_v2, %v1487_v34  ;;  %vm1916_vm15 = vcmp.eq.s32.totalorder %v3863_v20, %v1904_v43  ;;  %v1885_v34 = vperm.slane %v4863_v40, 3 }
  0xdd   : > { %3223 = vmatpush.bf16.xpose.msk.msra.mxu3 %vm3222_vm11, %v3725_v54  ;;  %vm3218_vm11 = vmpackc.low %vm1779_vm1, %vm1775_vm0  ;;  %vm4997_vm0 = vcmp.eq.s32.totalorder %v3840_v2, %v1488_v36  ;;  %vm1920_vm2 = vcmp.eq.s32.totalorder %v3867_v22, %v1904_v43  ;;  %v580_v52 = vpop.f32.mrf.mxu0 }
  0xde   : > { %vm3212_vm4 = vmpackc.low %vm1778_vm5, %vm1774_vm13  ;;  %vm1917_vm5 = vcmp.eq.s32.totalorder %v3863_v20, %v1905_v46  ;;  %v617_v26 = vpop.f32.mrf.mxu3 }
  0xdf   : > { %vm3260_vm1 = vmpackc.low %vm1920_vm2, %vm1916_vm15 }
  0xe0   : > { %vm5830_vm13 = vmpackc.low %vm4972_vm9, %vm4972_vm9 }
  0xe1   : > { %3207 = vmatpush.bf16.xpose.msk.msra.mxu0 %vm3206_vm7, %v3725_v54  ;;  %vm1921_vm7 = vcmp.eq.s32.totalorder %v3867_v22, %v1905_v46  ;;  %vm5831_vm15 = vmpackc.low %vm4988_vm6, %vm4988_vm6  ;;  %vm1908_vm6 = vcmp.eq.s32.totalorder %v3840_v2, %v1904_v43  ;;  %v604_v49 = vpop.f32.mrf.mxu2 }
  0xe2   : > { %vm3266_vm10 = vmpackc.low %vm1921_vm7, %vm1917_vm5  ;;  %v605_v18 = vadd.f32 %v604_v49, %v592_v48  ;;  %vm1911_vm5 = vcmp.eq.s32.totalorder %v3909_v50, %v1903_v15  ;;  %vm5074_vm7 = vcmp.eq.s32.totalorder %v3840_v2, %v1749_v12  ;;  %v593_v3 = vpop.f32.mrf.mxu1  ;;  %v2015_v48 = vperm.slane %v4824_v59, 4 }
  0xe3   : > { %3219 = vmatpush.bf16.xpose.msk.msra.mxu2 %vm3218_vm11, %v3725_v54  ;;  %vm1918_vm11 = vcmp.eq.s32.totalorder %v3867_v22, %v1902_v61  ;;  %vm5833_vm9 = vmpackc.low %vm4997_vm0, %vm4997_vm0  ;;  %vm1909_vm0 = vcmp.eq.s32.totalorder %v3840_v2, %v1905_v46  ;;  %v2016_v49 = vperm.slane %v4840_v60, 4  ;;  %v2417_v3 = vperm.slane %v4863_v40, 7 }
  0xe4   : > { %3213 = vmatpush.bf16.xpose.msk.msra.mxu1 %vm3212_vm4, %v3725_v54  ;;  %vm3248_vm4 = vmpackc.low %vm1918_vm11, %vm1914_vm3  ;;  %vm1913_vm11 = vcmp.eq.s32.totalorder %v3909_v50, %v1905_v46  ;;  %v5071_v58 = vadd.f32 %v617_v26, %v605_v18  ;;  %v2018_v26 = vperm.slane %v4863_v40, 4  ;;  %v2282_v46 = vperm.slane %v4840_v60, 6 }
  0xe5   : > { %3225 = vmatpush.bf16.xpose.msk.msra.mxu3 %vm4982_vm12, %v3725_v54  ;;  %vm1919_vm12 = vcmp.eq.s32.totalorder %v3867_v22, %v1903_v15  ;;  %vm5832_vm3 = vmpackc.low %vm4978_vm14, %vm4978_vm14  ;;  %vm1906_vm14 = vcmp.eq.s32.totalorder %v3840_v2, %v1902_v61  ;;  %v710_v11 = vpop.f32.mrf.mxu0 }
  0xe6   : > { %vm3254_vm2 = vmpackc.low %vm1919_vm12, %vm1915_vm8  ;;  %vm1910_vm8 = vcmp.eq.s32.totalorder %v3909_v50, %v1902_v61  ;;  %v619_v10 = vpop.f32.mrf.mxu3  ;;  %v2168_v61 = vperm.slane %v4579_v19, 5 }
  0xe7   : > { %vm3250_vm12 = vmpackc.low %vm1910_vm8, %vm1906_vm14  ;;  %vm2049_vm14 = vcmp.eq.s32.totalorder %v3863_v20, %v2037_v1  ;;  %vm2053_vm8 = vcmp.eq.s32.totalorder %v3867_v22, %v2037_v1 }
  0xe8   : > { %3165 = vmatmul.msk.bf16.vlgmr.msrb.gmra.mxu0 %vm5830_vm13, %v3725_v54  ;;  %vm1907_vm13 = vcmp.eq.s32.totalorder %v3840_v2, %v1903_v15 }
  0xe9   : > { %3177 = vmatmul.msk.bf16.vlgmr.msrb.gmra.mxu2 %vm5831_vm15, %v3725_v54  ;;  %3249 = vmatpush.bf16.xpose.msk.msrb.mxu0 %vm3248_vm4, %v3725_v54  ;;  %vm5080_vm4 = vcmp.eq.s32.totalorder %v3840_v2, %v1750_v21  ;;  %vm5084_vm15 = vmpackc.low %vm1913_vm11, %vm1909_vm0  ;;  %v606_v8 = vpop.f32.mrf.mxu2  ;;  %vm2047_vm11 = vcmp.eq.s32.totalorder %v3863_v20, %v2035_v42  ;;  %vm2048_vm0 = vcmp.eq.s32.totalorder %v3863_v20, %v2036_v7  ;;  %v2017_v21 = vperm.slane %v4844_v63, 4 }
  0xea   : > { %v723_v17 = vpop.f32.mrf.mxu1  ;;  %v2148_v8 = vperm.slane %v4824_v59, 5 }
  0xeb   : > { %3261 = vmatpush.bf16.xpose.msk.msrb.mxu2 %vm3260_vm1, %v3725_v54  ;;  %3171 = vmatmul.msk.bf16.vlgmr.msrb.gmra.mxu1 %vm5832_vm3, %v3725_v54  ;;  %vm1912_vm1 = vcmp.eq.s32.totalorder %v3909_v50, %v1904_v43  ;;  %vm3256_vm3 = vmpackc.low %vm1911_vm5, %vm1907_vm13  ;;  %vm2050_vm5 = vcmp.eq.s32.totalorder %v3863_v20, %v2038_v6  ;;  %v724_v23 = vadd.f32 %v723_v17, %v710_v11  ;;  %v2149_v11 = vperm.slane %v4840_v60, 5 }
  0xec   : > { %3183 = vmatmul.msk.bf16.vlgmr.msrb.gmra.mxu3 %vm5833_vm9, %v3725_v54  ;;  %3255 = vmatpush.bf16.xpose.msk.msrb.mxu1 %vm3254_vm2, %v3725_v54  ;;  %vm5090_vm2 = vcmp.eq.s32.totalorder %v3840_v2, %v1751_v51  ;;  %vm5846_vm13 = vmpackc.low %vm5074_vm7, %vm5074_vm7  ;;  %v2150_v17 = vperm.slane %v4844_v63, 5 }
  0xed   : > { %3267 = vmatpush.bf16.xpose.msk.msrb.mxu3 %vm3266_vm10, %v3725_v54  ;;  %vm5065_vm10 = vmpackc.low %vm1912_vm1, %vm1908_vm6  ;;  %vm5099_vm6 = vcmp.eq.s32.totalorder %v3840_v2, %v1752_v53  ;;  %v712_v33 = vpop.f32.mrf.mxu0  ;;  %v2303_v53 = vperm.slane %v4559_v13, 6 }
  0xee   : > { %vm3304_vm1 = vmpackc.low %vm2053_vm8, %vm2049_vm14  ;;  %v749_v32 = vpop.f32.mrf.mxu3 }
  0xef   : > { %vm5847_vm14 = vmpackc.low %vm5090_vm2, %vm5090_vm2  ;;  %vm2041_vm2 = vcmp.eq.s32.totalorder %v3840_v2, %v2037_v1 }
  0xf0   : > { %vm5849_vm7 = vmpackc.low %vm5099_vm6, %vm5099_vm6  ;;  %vm2042_vm6 = vcmp.eq.s32.totalorder %v3840_v2, %v2038_v6 }
  0xf1   : > { %3251 = vmatpush.bf16.xpose.msk.msrb.mxu0 %vm3250_vm12, %v3725_v54  ;;  %vm2054_vm12 = vcmp.eq.s32.totalorder %v3867_v22, %v2038_v6  ;;  %v736_v28 = vpop.f32.mrf.mxu2 }
  0xf2   : > { %vm3310_vm9 = vmpackc.low %vm2054_vm12, %vm2050_vm5  ;;  %v737_v30 = vadd.f32 %v736_v28, %v724_v23  ;;  %vm2044_vm5 = vcmp.eq.s32.totalorder %v3909_v50, %v2036_v7  ;;  %vm5176_vm12 = vcmp.eq.s32.totalorder %v3840_v2, %v1882_v25  ;;  %v725_v43 = vpop.f32.mrf.mxu1  ;;  %v2151_v28 = vperm.slane %v4863_v40, 5 }
  0xf3   : > { %3263 = vmatpush.bf16.xpose.msk.msrb.mxu2 %vm5065_vm10, %v3725_v54  ;;  %vm2051_vm10 = vcmp.eq.s32.totalorder %v3867_v22, %v2035_v42 }
  0xf4   : > { %3257 = vmatpush.bf16.xpose.msk.msrb.mxu1 %vm3256_vm3, %v3725_v54  ;;  %vm3292_vm3 = vmpackc.low %vm2051_vm10, %vm2047_vm11  ;;  %vm2046_vm10 = vcmp.eq.s32.totalorder %v3909_v50, %v2038_v6  ;;  %v750_v36 = vadd.f32 %v749_v32, %v737_v30  ;;  %v2436_v30 = vperm.slane %v4559_v13, 7  ;;  %v2437_v13 = vperm.slane %v4591_v24, 7 }
  0xf5   : > { %3269 = vmatpush.bf16.xpose.msk.msrb.mxu3 %vm5084_vm15, %v3725_v54  ;;  %vm2052_vm15 = vcmp.eq.s32.totalorder %v3867_v22, %v2036_v7  ;;  %vm5848_vm11 = vmpackc.low %vm5080_vm4, %vm5080_vm4  ;;  %vm2039_vm4 = vcmp.eq.s32.totalorder %v3840_v2, %v2035_v42 }
  0xf6   : > { %vm3298_vm8 = vmpackc.low %vm2052_vm15, %vm2048_vm0  ;;  %vm2043_vm0 = vcmp.eq.s32.totalorder %v3909_v50, %v2035_v42  ;;  %v5192_v45 = vadd.f32 %v750_v36, %v5071_v58  ;;  %v751_v9 = vpop.f32.mrf.mxu3  ;;  %v2302_v42 = vperm.slane %v4599_v27, 6  ;;  %v2415_v58 = vperm.slane %v4840_v60, 7 }
  0xf7   : > { %vm3294_vm15 = vmpackc.low %vm2043_vm0, %vm2039_vm4  ;;  %vm2182_vm4 = vcmp.eq.s32.totalorder %v3863_v20, %v2170_v41  ;;  %vm2186_vm0 = vcmp.eq.s32.totalorder %v3867_v22, %v2170_v41 }
  0xf8   : > { %3209 = vmatmul.msk.bf16.vlgmr.msra.gmra.mxu0 %vm5846_vm13, %v3725_v54  ;;  %vm2040_vm13 = vcmp.eq.s32.totalorder %v3840_v2, %v2036_v7 }
  0xf9   : > { %3221 = vmatmul.msk.bf16.vlgmr.msra.gmra.mxu2 %vm5847_vm14, %v3725_v54  ;;  %3293 = vmatpush.bf16.xpose.msk.msra.mxu0 %vm3292_vm3, %v3725_v54  ;;  %vm5182_vm3 = vcmp.eq.s32.totalorder %v3840_v2, %v1883_v29  ;;  %vm5186_vm14 = vmpackc.low %vm2046_vm10, %vm2042_vm6  ;;  %v738_v16 = vpop.f32.mrf.mxu2  ;;  %vm2180_vm10 = vcmp.eq.s32.totalorder %v3863_v20, %v2168_v61 }
  0xfb   : > { %3305 = vmatpush.bf16.xpose.msk.msra.mxu2 %vm3304_vm1, %v3725_v54  ;;  %3215 = vmatmul.msk.bf16.vlgmr.msra.gmra.mxu1 %vm5848_vm11, %v3725_v54  ;;  %vm2045_vm1 = vcmp.eq.s32.totalorder %v3909_v50, %v2037_v1  ;;  %vm3300_vm11 = vmpackc.low %vm2044_vm5, %vm2040_vm13  ;;  %vm2183_vm5 = vcmp.eq.s32.totalorder %v3863_v20, %v2171_v14  ;;  %v2301_v1 = vperm.slane %v4579_v19, 6 }
  0xfc   : > { %3227 = vmatmul.msk.bf16.vlgmr.msra.gmra.mxu3 %vm5849_vm7, %v3725_v54  ;;  %3299 = vmatpush.bf16.xpose.msk.msra.mxu1 %vm3298_vm8, %v3725_v54  ;;  %vm5195_vm8 = vcmp.eq.s32.totalorder %v3840_v2, %v1884_v31  ;;  %vm5862_vm13 = vmpackc.low %vm5176_vm12, %vm5176_vm12 }
  0xfd   : > { %3311 = vmatpush.bf16.xpose.msk.msra.mxu3 %vm3310_vm9, %v3725_v54  ;;  %vm5169_vm9 = vmpackc.low %vm2045_vm1, %vm2041_vm2  ;;  %vm5204_vm2 = vcmp.eq.s32.totalorder %v3840_v2, %v1885_v34  ;;  %v2434_v34 = vperm.slane %v4579_v19, 7  ;;  %v2435_v19 = vperm.slane %v4599_v27, 7 }
  0xfe   : > { %vm3348_vm1 = vmpackc.low %vm2186_vm0, %vm2182_vm4 }
  0xff   : > { %v5232_v47 = vpop.f32.mrf.mxu0  ;;  %vm5863_vm4 = vmpackc.low %vm5195_vm8, %vm5195_vm8  ;;  %vm2174_vm8 = vcmp.eq.s32.totalorder %v3840_v2, %v2170_v41 }
 0x100   : > { %v5236_v62 = vpop.f32.mrf.mxu1  ;;  %vm5865_vm12 = vmpackc.low %vm5204_vm2, %vm5204_vm2  ;;  %vm2175_vm2 = vcmp.eq.s32.totalorder %v3840_v2, %v2171_v14 }
 0x101   : > { %3295 = vmatpush.bf16.xpose.msk.msra.mxu0 %vm3294_vm15, %v3725_v54  ;;  %vm2187_vm15 = vcmp.eq.s32.totalorder %v3867_v22, %v2171_v14 }
 0x102   : > { %vm3354_vm7 = vmpackc.low %vm2187_vm15, %vm2183_vm5  ;;  %v5267_v12 = vpop.f32.mrf.mxu2  ;;  %vm2177_vm5 = vcmp.eq.s32.totalorder %v3909_v50, %v2169_v56  ;;  %vm5283_vm15 = vcmp.eq.s32.totalorder %v3840_v2, %v2015_v48 }
 0x103   : > { %3307 = vmatpush.bf16.xpose.msk.msra.mxu2 %vm5169_vm9, %v3725_v54  ;;  %vm2184_vm9 = vcmp.eq.s32.totalorder %v3867_v22, %v2168_v61 }
 0x104   : > { %3301 = vmatpush.bf16.xpose.msk.msra.mxu1 %vm3300_vm11, %v3725_v54  ;;  %vm2185_vm11 = vcmp.eq.s32.totalorder %v3867_v22, %v2169_v56  ;;  %vm3336_vm6 = vmpackc.low %vm2184_vm9, %vm2180_vm10  ;;  %vm2179_vm9 = vcmp.eq.s32.totalorder %v3909_v50, %v2171_v14  ;;  %v2284_v14 = vperm.slane %v4863_v40, 6 }
 0x105   : > { %3313 = vmatpush.bf16.xpose.msk.msra.mxu3 %vm5186_vm14, %v3725_v54  ;;  %vm2181_vm14 = vcmp.eq.s32.totalorder %v3863_v20, %v2169_v56  ;;  %vm5864_vm10 = vmpackc.low %vm5182_vm3, %vm5182_vm3  ;;  %vm2172_vm3 = vcmp.eq.s32.totalorder %v3840_v2, %v2168_v61 }
 0x106   : > { %vm3342_vm0 = vmpackc.low %vm2185_vm11, %vm2181_vm14  ;;  %vm5289_vm11 = vcmp.eq.s32.totalorder %v3840_v2, %v2016_v49  ;;  %v857_v49 = vadd.f32 %v5236_v62, %v5232_v47 }
 0x107   : > { %v845_v51 = vpop.f32.mrf.mxu0 }
 0x108   : > { %3253 = vmatmul.msk.bf16.vlgmr.msrb.gmra.mxu0 %vm5862_vm13, %v3725_v54  ;;  %v5277_v18 = vpop.f32.mrf.mxu3  ;;  %v858_v57 = vpop.f32.mrf.mxu1  ;;  %v870_v0 = vadd.f32 %v5267_v12, %v857_v49 }
 0x109   : > { %3265 = vmatmul.msk.bf16.vlgmr.msrb.gmra.mxu2 %vm5863_vm4, %v3725_v54  ;;  %3337 = vmatpush.bf16.xpose.msk.msrb.mxu0 %vm3336_vm6, %v3725_v54  ;;  %vm2176_vm6 = vcmp.eq.s32.totalorder %v3909_v50, %v2168_v61  ;;  %vm5293_vm4 = vmpackc.low %vm2179_vm9, %vm2175_vm2  ;;  %vm2313_vm9 = vcmp.eq.s32.totalorder %v3863_v20, %v2301_v1 }
 0x10a   : > { %vm3338_vm14 = vmpackc.low %vm2176_vm6, %vm2172_vm3  ;;  %vm2315_vm3 = vcmp.eq.s32.totalorder %v3863_v20, %v2303_v53  ;;  %vm2319_vm6 = vcmp.eq.s32.totalorder %v3867_v22, %v2303_v53  ;;  %v871_v5 = vpop.f32.mrf.mxu2  ;;  %v883_v40 = vadd.f32 %v5277_v18, %v870_v0 }
 0x10b   : > { %3349 = vmatpush.bf16.xpose.msk.msrb.mxu2 %vm3348_vm1, %v3725_v54  ;;  %3259 = vmatmul.msk.bf16.vlgmr.msrb.gmra.mxu1 %vm5864_vm10, %v3725_v54  ;;  %vm2178_vm1 = vcmp.eq.s32.totalorder %v3909_v50, %v2170_v41 }
 0x10c   : > { %3271 = vmatmul.msk.bf16.vlgmr.msrb.gmra.mxu3 %vm5865_vm12, %v3725_v54  ;;  %3343 = vmatpush.bf16.xpose.msk.msrb.mxu1 %vm3342_vm0, %v3725_v54  ;;  %vm3350_vm13 = vmpackc.low %vm2178_vm1, %vm2174_vm8  ;;  %vm5299_vm0 = vcmp.eq.s32.totalorder %v3840_v2, %v2017_v21  ;;  %vm5308_vm8 = vcmp.eq.s32.totalorder %v3840_v2, %v2018_v26  ;;  %v2414_v26 = vperm.slane %v4824_v59, 7 }
 0x10d   : > { %3355 = vmatpush.bf16.xpose.msk.msrb.mxu3 %vm3354_vm7, %v3725_v54  ;;  %vm2173_vm7 = vcmp.eq.s32.totalorder %v3840_v2, %v2169_v56  ;;  %vm3392_vm1 = vmpackc.low %vm2319_vm6, %vm2315_vm3 }
 0x10e   : > { %vm3344_vm10 = vmpackc.low %vm2177_vm5, %vm2173_vm7  ;;  %vm2316_vm5 = vcmp.eq.s32.totalorder %v3863_v20, %v2304_v38 }
 0x10f   : > { %vm5876_vm7 = vmpackc.low %vm5283_vm15, %vm5283_vm15 }
 0x110   : > { %v884_v6 = vpop.f32.mrf.mxu3  ;;  %v5334_v39 = vpop.f32.mrf.mxu0  ;;  %vm5877_vm3 = vmpackc.low %vm5299_vm0, %vm5299_vm0  ;;  %vm2307_vm0 = vcmp.eq.s32.totalorder %v3840_v2, %v2303_v53 }
 0x111   : > { %3339 = vmatpush.bf16.xpose.msk.msrb.mxu0 %vm3338_vm14, %v3725_v54  ;;  %vm2320_vm14 = vcmp.eq.s32.totalorder %v3867_v22, %v2304_v38  ;;  %v5338_v7 = vpop.f32.mrf.mxu1  ;;  %vm5879_vm15 = vmpackc.low %vm5308_vm8, %vm5308_vm8  ;;  %vm2308_vm8 = vcmp.eq.s32.totalorder %v3840_v2, %v2304_v38 }
 0x112   : > { %vm3398_vm12 = vmpackc.low %vm2320_vm14, %vm2316_vm5  ;;  %vm2310_vm5 = vcmp.eq.s32.totalorder %v3909_v50, %v2302_v42  ;;  %vm5385_vm14 = vcmp.eq.s32.totalorder %v3840_v2, %v2148_v8  ;;  %v990_v52 = vadd.f32 %v5338_v7, %v5334_v39 }
 0x113   : > { %3351 = vmatpush.bf16.xpose.msk.msrb.mxu2 %vm3350_vm13, %v3725_v54  ;;  %vm2317_vm13 = vcmp.eq.s32.totalorder %v3867_v22, %v2301_v1 }
 0x114   : > { %3345 = vmatpush.bf16.xpose.msk.msrb.mxu1 %vm3344_vm10, %v3725_v54  ;;  %vm2318_vm10 = vcmp.eq.s32.totalorder %v3867_v22, %v2302_v42  ;;  %vm3380_vm2 = vmpackc.low %vm2317_vm13, %vm2313_vm9  ;;  %vm2312_vm13 = vcmp.eq.s32.totalorder %v3909_v50, %v2304_v38 }
 0x115   : > { %3357 = vmatpush.bf16.xpose.msk.msrb.mxu3 %vm5293_vm4, %v3725_v54  ;;  %vm2314_vm4 = vcmp.eq.s32.totalorder %v3863_v20, %v2302_v42  ;;  %vm5878_vm9 = vmpackc.low %vm5289_vm11, %vm5289_vm11  ;;  %vm2305_vm11 = vcmp.eq.s32.totalorder %v3840_v2, %v2301_v1 }
 0x116   : > { %vm3386_vm6 = vmpackc.low %vm2318_vm10, %vm2314_vm4  ;;  %vm5391_vm10 = vcmp.eq.s32.totalorder %v3840_v2, %v2149_v11 }
 0x118   : > { %3297 = vmatmul.msk.bf16.vlgmr.msra.gmra.mxu0 %vm5876_vm7, %v3725_v54  ;;  %v5379_v23 = vpop.f32.mrf.mxu3  ;;  %v978_v25 = vpop.f32.mrf.mxu0 }
 0x119   : > { %3309 = vmatmul.msk.bf16.vlgmr.msra.gmra.mxu2 %vm5877_vm3, %v3725_v54  ;;  %3381 = vmatpush.bf16.xpose.msk.msra.mxu0 %vm3380_vm2, %v3725_v54  ;;  %vm2309_vm2 = vcmp.eq.s32.totalorder %v3909_v50, %v2301_v1  ;;  %v991_v31 = vpop.f32.mrf.mxu1  ;;  %vm5395_vm3 = vmpackc.low %vm2312_vm13, %vm2308_vm8  ;;  %vm2446_vm13 = vcmp.eq.s32.totalorder %v3863_v20, %v2434_v34 }
 0x11a   : > { %v5369_v10 = vpop.f32.mrf.mxu2  ;;  %vm3382_vm4 = vmpackc.low %vm2309_vm2, %vm2305_vm11  ;;  %vm2448_vm11 = vcmp.eq.s32.totalorder %v3863_v20, %v2436_v30  ;;  %vm2452_vm2 = vcmp.eq.s32.totalorder %v3867_v22, %v2436_v30 }
 0x11b   : > { %3393 = vmatpush.bf16.xpose.msk.msra.mxu2 %vm3392_vm1, %v3725_v54  ;;  %3303 = vmatmul.msk.bf16.vlgmr.msra.gmra.mxu1 %vm5878_vm9, %v3725_v54  ;;  %vm2311_vm1 = vcmp.eq.s32.totalorder %v3909_v50, %v2303_v53  ;;  %v2416_v53 = vperm.slane %v4844_v63, 7  ;;  %v1003_v59 = vadd.f32 %v5369_v10, %v990_v52 }
 0x11c   : > { %3315 = vmatmul.msk.bf16.vlgmr.msra.gmra.mxu3 %vm5879_vm15, %v3725_v54  ;;  %3387 = vmatpush.bf16.xpose.msk.msra.mxu1 %vm3386_vm6, %v3725_v54  ;;  %vm3394_vm7 = vmpackc.low %vm2311_vm1, %vm2307_vm0  ;;  %vm5401_vm6 = vcmp.eq.s32.totalorder %v3840_v2, %v2150_v17  ;;  %vm5410_vm0 = vcmp.eq.s32.totalorder %v3840_v2, %v2151_v28 }
 0x11d   : > { %3399 = vmatpush.bf16.xpose.msk.msra.mxu3 %vm3398_vm12, %v3725_v54  ;;  %vm2306_vm12 = vcmp.eq.s32.totalorder %v3840_v2, %v2302_v42  ;;  %vm3436_vm1 = vmpackc.low %vm2452_vm2, %vm2448_vm11  ;;  %v1016_v6 = vadd.f32 %v5379_v23, %v1003_v59 }
 0x11e   : > { %vm3388_vm9 = vmpackc.low %vm2310_vm5, %vm2306_vm12  ;;  %vm2449_vm5 = vcmp.eq.s32.totalorder %v3863_v20, %v2437_v13 }
 0x11f   : > { %vm5890_vm12 = vmpackc.low %vm5385_vm14, %vm5385_vm14 }
 0x120   : > { %v1017_v27 = vpop.f32.mrf.mxu3  ;;  %vm5891_vm11 = vmpackc.low %vm5401_vm6, %vm5401_vm6  ;;  %vm2440_vm6 = vcmp.eq.s32.totalorder %v3840_v2, %v2436_v30 }
 0x121   : > { %3383 = vmatpush.bf16.xpose.msk.msra.mxu0 %vm3382_vm4, %v3725_v54  ;;  %vm2453_vm4 = vcmp.eq.s32.totalorder %v3867_v22, %v2437_v13  ;;  %vm5893_vm14 = vmpackc.low %vm5410_vm0, %vm5410_vm0 }
 0x122   : > { %v1004_v24 = vpop.f32.mrf.mxu2  ;;  %v5436_v37 = vpop.f32.mrf.mxu0  ;;  %vm3442_vm15 = vmpackc.low %vm2453_vm4, %vm2449_vm5  ;;  %vm2439_vm5 = vcmp.eq.s32.totalorder %v3840_v2, %v2435_v19 }
 0x123   : > { %3395 = vmatpush.bf16.xpose.msk.msra.mxu2 %vm3394_vm7, %v3725_v54  ;;  %vm2450_vm7 = vcmp.eq.s32.totalorder %v3867_v22, %v2434_v34 }
 0x124   : > { %3389 = vmatpush.bf16.xpose.msk.msra.mxu1 %vm3388_vm9, %v3725_v54  ;;  %vm2451_vm9 = vcmp.eq.s32.totalorder %v3867_v22, %v2435_v19  ;;  %vm3424_vm8 = vmpackc.low %vm2450_vm7, %vm2446_vm13  ;;  %vm2441_vm7 = vcmp.eq.s32.totalorder %v3840_v2, %v2437_v13 }
 0x125   : > { %3401 = vmatpush.bf16.xpose.msk.msra.mxu3 %vm5395_vm3, %v3725_v54  ;;  %vm2447_vm3 = vcmp.eq.s32.totalorder %v3863_v20, %v2435_v19  ;;  %vm5892_vm13 = vmpackc.low %vm5391_vm10, %vm5391_vm10  ;;  %vm2442_vm10 = vcmp.eq.s32.totalorder %v3909_v50, %v2434_v34 }
 0x126   : > { %v1122_v41 = vpop.f32.mrf.mxu1  ;;  %vm3430_vm2 = vmpackc.low %vm2451_vm9, %vm2447_vm3 }
 0x127   : > { %v1123_v1 = vadd.f32 %v1122_v41, %v5436_v37 }
 0x128   : > { %3341 = vmatmul.msk.bf16.vlgmr.msrb.gmra.mxu0 %vm5890_vm12, %v3725_v54  ;;  %vm2445_vm12 = vcmp.eq.s32.totalorder %v3909_v50, %v2437_v13  ;;  %v5474_v22 = vpop.f32.mrf.mxu3 }
 0x129   : > { %3353 = vmatmul.msk.bf16.vlgmr.msrb.gmra.mxu2 %vm5891_vm11, %v3725_v54  ;;  %3425 = vmatpush.bf16.xpose.msk.msrb.mxu0 %vm3424_vm8, %v3725_v54  ;;  %vm2438_vm8 = vcmp.eq.s32.totalorder %v3840_v2, %v2434_v34  ;;  %vm3444_vm3 = vmpackc.low %vm2445_vm12, %vm2441_vm7  ;;  %vm5483_vm11 = vcmp.eq.s32.totalorder %v3840_v2, %v2281_v44  ;;  %vm5512_vm7 = vcmp.eq.s32.totalorder %v3840_v2, %v2414_v26 }
 0x12a   : > { %v1135_v20 = vpop.f32.mrf.mxu2  ;;  %v1111_v43 = vpop.f32.mrf.mxu0  ;;  %vm3426_vm4 = vmpackc.low %vm2442_vm10, %vm2438_vm8  ;;  %vm5518_vm12 = vcmp.eq.s32.totalorder %v3840_v2, %v2416_v53 }
 0x12b   : > { %3437 = vmatpush.bf16.xpose.msk.msrb.mxu2 %vm3436_vm1, %v3725_v54  ;;  %3347 = vmatmul.msk.bf16.vlgmr.msrb.gmra.mxu1 %vm5892_vm13, %v3725_v54  ;;  %vm2444_vm1 = vcmp.eq.s32.totalorder %v3909_v50, %v2436_v30  ;;  %vm2286_vm13 = vcmp.eq.s32.totalorder %v3840_v2, %v2282_v46  ;;  %v1136_v38 = vadd.f32 %v1135_v20, %v1123_v1 }
 0x12c   : > { %3359 = vmatmul.msk.bf16.vlgmr.msrb.gmra.mxu3 %vm5893_vm14, %v3725_v54  ;;  %3431 = vmatpush.bf16.xpose.msk.msrb.mxu1 %vm3430_vm2, %v3725_v54  ;;  %vm3438_vm0 = vmpackc.low %vm2444_vm1, %vm2440_vm6  ;;  %vm2287_vm2 = vcmp.eq.s32.totalorder %v3840_v2, %v2283_v55  ;;  %vm2288_vm6 = vcmp.eq.s32.totalorder %v3840_v2, %v2284_v14 }
 0x12d   : > { %3443 = vmatpush.bf16.xpose.msk.msrb.mxu3 %vm3442_vm15, %v3725_v54  ;;  %vm2443_vm15 = vcmp.eq.s32.totalorder %v3909_v50, %v2435_v19  ;;  %vm3384_vm14 = vmpackc.low %vm5483_vm11, %vm5483_vm11  ;;  %v1149_v7 = vadd.f32 %v5474_v22, %v1136_v38  ;;  %vm2547_vm11 = vcmask 261120  }
 0x12e   : > { %v1124_v61 = vpop.f32.mrf.mxu1  ;;  %vm3432_vm9 = vmpackc.low %vm2443_vm15, %vm2439_vm5  ;;  %vm5532_vm15 = vcmp.eq.s32.totalorder %v3840_v2, %v2417_v3 }
 0x12f   : > { %vm3396_vm1 = vmpackc.low %vm2287_vm2, %vm2287_vm2 }
 0x130   : > { %v1150_v56 = vpop.f32.mrf.mxu3  ;;  %vm3390_vm8 = vmpackc.low %vm2286_vm13, %vm2286_vm13 }
 0x131   : > { %3427 = vmatpush.bf16.xpose.msk.msrb.mxu0 %vm3426_vm4, %v3725_v54  ;;  %vm3402_vm10 = vmpackc.low %vm2288_vm6, %vm2288_vm6 }
 0x132   : > { %v1137_v50 = vpop.f32.mrf.mxu2  ;;  %v1242_v16 = vpop.f32.mrf.mxu0  ;;  %vm3428_vm5 = vmpackc.low %vm5512_vm7, %vm5512_vm7 }
 0x133   : > { %3439 = vmatpush.bf16.xpose.msk.msrb.mxu2 %vm3438_vm0, %v3725_v54  ;;  %vm5523_vm0 = vcmp.eq.s32.totalorder %v3840_v2, %v2415_v58  ;;  %vm3440_vm4 = vmpackc.low %vm5518_vm12, %vm5518_vm12  ;;  %v886_v2 = vadd.f32 %v883_v40, %v5192_v45 }
 0x134   : > { %3433 = vmatpush.bf16.xpose.msk.msrb.mxu1 %vm3432_vm9, %v3725_v54  ;;  %vm3446_vm9 = vmpackc.low %vm5532_vm15, %vm5532_vm15 }
 0x135   : > { %3445 = vmatpush.bf16.xpose.msk.msrb.mxu3 %vm3444_vm3, %v3725_v54  ;;  %vm3434_vm3 = vmpackc.low %vm5523_vm0, %vm5523_vm0  ;;  %v1019_v10 = vadd.f32 %v1016_v6, %v886_v2 }
 0x136   : > { %v1255_v9 = vpop.f32.mrf.mxu1 }
 0x137   : > { %v1256_v62 = vadd.f32 %v1255_v9, %v1242_v16  ;;  %v1152_v23 = vadd.f32 %v1149_v7, %v1019_v10 }
 0x138   : > { %3385 = vmatmul.msk.bf16.vlgmr.msra.gmra.mxu0 %vm3384_vm14, %v3725_v54 }
 0x139   : > { %3397 = vmatmul.msk.bf16.vlgmr.msra.gmra.mxu2 %vm3396_vm1, %v3725_v54 }
 0x13a   : > { %v1268_v48 = vpop.f32.mrf.mxu2  ;;  %v1244_v51 = vpop.f32.mrf.mxu0 }
 0x13b   : > { %3391 = vmatmul.msk.bf16.vlgmr.msra.gmra.mxu1 %vm3390_vm8, %v3725_v54  ;;  %v1269_v39 = vadd.f32 %v1268_v48, %v1256_v62 }
 0x13c   : > { %3403 = vmatmul.msk.bf16.vlgmr.msra.gmra.mxu3 %vm3402_vm10, %v3725_v54 }
 0x13e   : > { %v1257_v57 = vpop.f32.mrf.mxu1 }
 0x13f   : > { %v1281_v21 = vpop.f32.mrf.mxu3 }
 0x140   : > { %v1282_v11 = vadd.f32 %v1281_v21, %v1269_v39 }
 0x142   : > { %v1270_v60 = vpop.f32.mrf.mxu2  ;;  %v1285_v29 = vadd.f32 %v1282_v11, %v1152_v23 }
 0x145   : > { %v1375_v5 = vpop.f32.mrf.mxu0 }
 0x147   : > { %v1283_v42 = vpop.f32.mrf.mxu3 }
 0x148   : > { %v1388_v18 = vpop.f32.mrf.mxu1  ;;  %3429 = vmatmul.msk.bf16.vlgmr.msrb.gmra.mxu0 %vm3428_vm5, %v3725_v54 }
 0x149   : > { %v1389_v8 = vadd.f32 %v1388_v18, %v1375_v5  ;;  %3441 = vmatmul.msk.bf16.vlgmr.msrb.gmra.mxu2 %vm3440_vm4, %v3725_v54 }
 0x14b   : > { %3435 = vmatmul.msk.bf16.vlgmr.msrb.gmra.mxu1 %vm3434_vm3, %v3725_v54 }
 0x14c   : > { %3447 = vmatmul.msk.bf16.vlgmr.msrb.gmra.mxu3 %vm3446_vm9, %v3725_v54  ;;  %v1401_v17 = vpop.f32.mrf.mxu2 }
 0x14d   : > { %v1402_v25 = vadd.f32 %v1401_v17, %v1389_v8  ;;  %v1377_v28 = vpop.f32.mrf.mxu0 }
 0x14f   : > { %v1414_v45 = vpop.f32.mrf.mxu3 }
 0x150   : > { %v1415_v30 = vadd.f32 %v1414_v45, %v1402_v25  ;;  %v1390_v31 = vpop.f32.mrf.mxu1 }
 0x152   : > { %v1418_v32 = vadd.f32 %v1415_v30, %v1285_v29 }
 0x154   : > { %2548 = vst.msk [vmem:[%s256_s9] sm:$0xff] %vm2547_vm11, %v1418_v32  ;;  %v1403_v54 = vpop.f32.mrf.mxu2 }
 0x155   : > { %v1654_v34 = vpop.f32.mrf.mxu0 }
 0x157   : > { %v1416_v33 = vpop.f32.mrf.mxu3 }
 0x158   : > { %3632 = shalt.err (!%p3629_p13)
}
 0x159   : > { %3476 = dma.vmem_to_hbm [thread:$0]  (%p3797_p9), %s2570_s19, 128, %s2572_s21, %s2551_s23   ;;  %v1667_v35 = vpop.f32.mrf.mxu1 }
 0x15a   : > { %v1668_v13 = vadd.f32 %v1667_v35, %v1654_v34  ;;  %s2582_s11 = scalar_lea.hbm %s5618_s3, %s3450_s30  ;;  %s263_s18 = scalar_lea.vmem [#allocation8], %s2742_s24 }
 0x15b   : > { %s2584_s19 = sshll.u32 %s263_s18, 4  ;;  %s2586_s21 = sshll.u32 %s2582_s11, 4  ;;  %s2585_s19 = int_to_ptr.vmem [resolvable:$true] %s2584_s19  ;;  %s2587_s21 = int_to_ptr.hbm [resolvable:$true] %s2586_s21 }
 0x15c   : > { %v1680_v36 = vpop.f32.mrf.mxu2  ;;  %s2556_s15 = scalar_lea.sflag [#allocation9], %s3823_s22  ;;  %s3647_s30 = sshra.s32 %s2587_s21, 4  ;;  %s3648_s30 = int_to_ptr.hbm [resolvable:$true] %s3647_s30 }
 0x15d   : > { %v1681_v19 = vadd.f32 %v1680_v36, %v1668_v13  ;;  %v1656_v27 = vpop.f32.mrf.mxu0  ;;  %s3649_s23 = scalar_lea.hbm %s3648_s30, 8  ;;  %s3653_s5 = scalar_lea.hbm %s5618_s3, 16 }
 0x15e   : > { %p3650_p0 = scmp.ne.s32.totalorder %s3648_s30, %s3649_s23  ;;  %p3654_p3 = scmp.lt.s32.totalorder %s3648_s30, %s5618_s3 }
 0x15f   : > { %v1693_v24 = vpop.f32.mrf.mxu3  ;;  %p3655_p4 = scmp.lt.s32.totalorder %s3653_s5, %s3649_s23 }
 0x160   : > { %v1694_v37 = vadd.f32 %v1693_v24, %v1681_v19  ;;  %p3651_p1 = pnand %p3650_p0, %p3797_p9 }
 0x161   : > { %v1669_v41 = vpop.f32.mrf.mxu1  ;;  %p3656_p5 = por %p3655_p4, %p3654_p3 }
 0x162   : > { %p3652_p2 = pneg %p3651_p1 }
 0x164   : > { %v1682_v20 = vpop.f32.mrf.mxu2  ;;  %p3657_p6 = pnand %p3656_p5, %p3652_p2 }
 0x165   : > { %v1706_v43 = vpop.f32.mrf.mxu0 }
 0x166   : > { %v1707_v44 = vadd.f32 %v1706_v43, %v1694_v37 }
 0x167   : > { %v1695_v22 = vpop.f32.mrf.mxu3 }
 0x169   : > { %v1719_v55 = vpop.f32.mrf.mxu1 }
 0x16a   : > { %v1720_v61 = vadd.f32 %v1719_v55, %v1707_v44 }
 0x16c   : > { %v1732_v46 = vpop.f32.mrf.mxu2 }
 0x16d   : > { %v1733_v14 = vadd.f32 %v1732_v46, %v1720_v61  ;;  %v1708_v50 = vpop.f32.mrf.mxu0 }
 0x16f   : > { %v1745_v15 = vpop.f32.mrf.mxu3 }
 0x170   : > { %v1746_v56 = vadd.f32 %v1745_v15, %v1733_v14 }
 0x171   : > { %v1721_v16 = vpop.f32.mrf.mxu1 }
 0x174   : > { %v1734_v9 = vpop.f32.mrf.mxu2 }
 0x175   : > { %v1838_v49 = vpop.f32.mrf.mxu0 }
 0x177   : > { %v1747_v48 = vpop.f32.mrf.mxu3 }
 0x179   : > { %v1851_v21 = vpop.f32.mrf.mxu1 }
 0x17a   : > { %v1852_v51 = vadd.f32 %v1851_v21, %v1838_v49 }
 0x17c   : > { %v1864_v26 = vpop.f32.mrf.mxu2 }
 0x17d   : > { %v1865_v52 = vadd.f32 %v1864_v26, %v1852_v51  ;;  %v1840_v57 = vpop.f32.mrf.mxu0 }
 0x17f   : > { %v1877_v53 = vpop.f32.mrf.mxu3 }
 0x180   : > { %v1878_v58 = vadd.f32 %v1877_v53, %v1865_v52 }
 0x181   : > { %v1853_v0 = vpop.f32.mrf.mxu1 }
 0x182   : > { %v1881_v1 = vadd.f32 %v1878_v58, %v1746_v56 }
 0x184   : > { %v1866_v3 = vpop.f32.mrf.mxu2 }
 0x185   : > { %v1971_v59 = vpop.f32.mrf.mxu0 }
 0x187   : > { %v1879_v47 = vpop.f32.mrf.mxu3 }
 0x189   : > { %v1984_v62 = vpop.f32.mrf.mxu1 }
 0x18a   : > { %v1985_v54 = vadd.f32 %v1984_v62, %v1971_v59 }
 0x18c   : > { %v1997_v63 = vpop.f32.mrf.mxu2 }
 0x18d   : > { %v1973_v12 = vpop.f32.mrf.mxu0  ;;  %v1998_v36 = vadd.f32 %v1997_v63, %v1985_v54 }
 0x18f   : > { %v2010_v60 = vpop.f32.mrf.mxu3 }
 0x190   : > { %v2011_v41 = vadd.f32 %v2010_v60, %v1998_v36 }
 0x191   : > { %v1986_v40 = vpop.f32.mrf.mxu1 }
 0x192   : > { %v2014_v46 = vadd.f32 %v2011_v41, %v1881_v1 }
 0x194   : > { %v1999_v38 = vpop.f32.mrf.mxu2 }
 0x195   : > { %v2104_v42 = vpop.f32.mrf.mxu0 }
 0x197   : > { %v2012_v4 = vpop.f32.mrf.mxu3 }
 0x199   : > { %v2117_v5 = vpop.f32.mrf.mxu1 }
 0x19a   : > { %v2118_v35 = vadd.f32 %v2117_v5, %v2104_v42 }
 0x19c   : > { %v2130_v6 = vpop.f32.mrf.mxu2 }
 0x19d   : > { %v2106_v18 = vpop.f32.mrf.mxu0  ;;  %v2131_v24 = vadd.f32 %v2130_v6, %v2118_v35 }
 0x19f   : > { %v2143_v39 = vpop.f32.mrf.mxu3 }
 0x1a0   : > { %v2144_v44 = vadd.f32 %v2143_v39, %v2131_v24 }
 0x1a1   : > { %v2119_v2 = vpop.f32.mrf.mxu1 }
 0x1a2   : > { %v2147_v50 = vadd.f32 %v2144_v44, %v2014_v46 }
 0x1a4   : > { %v2132_v7 = vpop.f32.mrf.mxu2 }
 0x1a5   : > { %v2237_v10 = vpop.f32.mrf.mxu0 }
 0x1a7   : > { %v2145_v8 = vpop.f32.mrf.mxu3 }
 0x1a9   : > { %v2250_v11 = vpop.f32.mrf.mxu1 }
 0x1aa   : > { %v2251_v19 = vadd.f32 %v2250_v11, %v2237_v10 }
 0x1ac   : > { %v2263_v17 = vpop.f32.mrf.mxu2 }
 0x1ad   : > { %v2239_v25 = vpop.f32.mrf.mxu0  ;;  %v2264_v20 = vadd.f32 %v2263_v17, %v2251_v19 }
 0x1af   : > { %v2276_v23 = vpop.f32.mrf.mxu3 }
 0x1b0   : > { %v2277_v14 = vadd.f32 %v2276_v23, %v2264_v20 }
 0x1b1   : > { %v2252_v45 = vpop.f32.mrf.mxu1 }
 0x1b2   : > { %v2280_v9 = vadd.f32 %v2277_v14, %v2147_v50 }
 0x1b4   : > { %v2265_v28 = vpop.f32.mrf.mxu2 }
 0x1b5   : > { %v2370_v30 = vpop.f32.mrf.mxu0 }
 0x1b7   : > { %v2278_v29 = vpop.f32.mrf.mxu3 }
 0x1b9   : > { %v2383_v31 = vpop.f32.mrf.mxu1 }
 0x1ba   : > { %v2384_v27 = vadd.f32 %v2383_v31, %v2370_v30 }
 0x1bc   : > { %v2396_v32 = vpop.f32.mrf.mxu2 }
 0x1bd   : > { %v2372_v34 = vpop.f32.mrf.mxu0  ;;  %v2397_v55 = vadd.f32 %v2396_v32, %v2384_v27 }
 0x1bf   : > { %v2409_v33 = vpop.f32.mrf.mxu3 }
 0x1c0   : > { %v2410_v56 = vadd.f32 %v2409_v33, %v2397_v55 }
 0x1c1   : > { %v2385_v13 = vpop.f32.mrf.mxu1 }
 0x1c2   : > { %v2413_v51 = vadd.f32 %v2410_v56, %v2280_v9 }
 0x1c4   : > { %v2398_v37 = vpop.f32.mrf.mxu2 }
 0x1c5   : > { %v2503_v43 = vpop.f32.mrf.mxu0 }
 0x1c7   : > { %v2411_v22 = vpop.f32.mrf.mxu3 }
 0x1c9   : > { %v2516_v61 = vpop.f32.mrf.mxu1 }
 0x1ca   : > { %v2517_v15 = vadd.f32 %v2516_v61, %v2503_v43 }
 0x1cc   : > { %v2529_v16 = vpop.f32.mrf.mxu2 }
 0x1cd   : > { %v2530_v48 = vadd.f32 %v2529_v16, %v2517_v15  ;;  %v2505_v21 = vpop.f32.mrf.mxu0 }
 0x1cf   : > { %v2542_v49 = vpop.f32.mrf.mxu3 }
 0x1d0   : > { %v2543_v26 = vadd.f32 %v2542_v49, %v2530_v48 }
 0x1d1   : > { %v2518_v52 = vpop.f32.mrf.mxu1 }
 0x1d2   : > { %v2546_v53 = vadd.f32 %v2543_v26, %v2413_v51 }
 0x1d4   : > { %2549 = vst.msk [vmem:[%s263_s18] sm:$0xff] %vm2547_vm11, %v2546_v53  ;;  %v2531_v57 = vpop.f32.mrf.mxu2 }
 0x1d5   : > { %3660 = shalt.err (!%p3657_p6)
}
 0x1d6   : > { %3477 = dma.vmem_to_hbm [thread:$0]  (%p3797_p9), %s2585_s19, 128, %s2587_s21, %s2556_s15  }
 0x1d7   : > { %v2544_v58 = vpop.f32.mrf.mxu3 }
 0x1d8 PF: > { %s2598_s22 = sand.u32 1, %s3703_s12   ;;  %p3488_p7 = pnand %p2732_p12, %p3804_p11 }
 0x1d9   : > { %s2599_s8 = scalar_lea.sflag [#allocation4], %s2598_s22 }
 0x1da   : > { %p3489_p8 = pneg %p3488_p7 }
 0x1dc   : > { %3694 = dma.done.wait (%p3489_p8), %s2599_s8, 128  }
 0x1dd   : > { %3696 = vsyncadd (%p3489_p8), %s2599_s8, 4294967168  ;;  %s2609_s29 = scalar_lea.sflag [#allocation9], %s2598_s22 }
 0x1de   : > { %3698 = dma.done.wait (%p3489_p8), %s2609_s29, 128  }
 0x1df   : > { %3700 = vsyncadd (%p3489_p8), %s2609_s29, 4294967168  ;;  %s26_s17 = sadd.s32 1, %s3723_s17   ;;  %s5904_s12 = smov %s3707_s13 }
 0x1e0   : > { %p23_p10 = scmp.ge.s32.totalorder %s26_s17, 4   ;;  %s5905_s13 = smov %s3711_s14 }
 0x1e1   : > { %s5906_s14 = smov %s3802_s26  ;;  %s5907_s15 = smov %s3719_s16 }
 0x1e2   : > { %s5908_s16 = smov %s5910_s20  ;;  %25 = sbr.rel (!%p23_p10) target bundleno = 10 (0xa), region = 105 }
 0x1e7   :  { %2615 = vsyncpa [#allocation3], 1 }
 0x1e8   :  { %2617 = vsyncpa [#allocation3 + $0x1], 1 }
 0x1e9   :  { %2618 = vsyncpa [#allocation6], 1 }
 0x1ea   :  { %2620 = vsyncpa [#allocation6 + $0x1], 1 }
 0x1eb   :  { %2621 = vsyncpa [#allocation4], 1 }
 0x1ec   :  { %2623 = vsyncpa [#allocation4 + $0x1], 1 }
 0x1ed   :  { %2624 = vsyncpa [#allocation9], 1 }
 0x1ee   :  { %2626 = vsyncpa [#allocation9 + $0x1], 1 }

</bundles_post_ra>
